<compile_context>
chip_gen: v7x
topology: tpu7x:2x2x1
jax: 0.10.0
libtpu: 0.0.40
codegen_flags: <defaults>
</compile_context>

<pallas_src>
import functools

import jax
import jax.numpy as jnp
from jax import lax
from jax.experimental import pallas as pl
from jax.experimental.pallas import tpu as pltpu


def _vmem_limit_bytes():
    """Scoped-VMEM budget scaled to the chip (~96 MiB v5e/v6e, ~48 MiB v7x)."""
    cap = 64 * 1024 * 1024
    try:
        cap = int(getattr(pltpu.get_tpu_info(), "vmem_capacity_bytes", cap))
    except Exception:   # non-TPU interpret / older jaxlib
        pass
    return int(min(cap * 3 // 4, 100 * 1024 * 1024))


_VMEM_LIMIT = _vmem_limit_bytes()

# bf16 MXU operands (f32 accumulation): ~3-4x MXU throughput on v6e/v7x and
# halves weight/activation HBM traffic.  Set to jnp.float32 for bit-closer
# numerics against an f32 torch reference.
_MXU_DTYPE = jnp.bfloat16


def _pick_tile(dim, pref, align):
    """Largest multiple of `align` dividing `dim` and <= `pref`.

    Falls back to the full dimension (a full-extent block always satisfies the
    (8,128) rule) only when no aligned divisor exists, so tiling/pipelining is
    not silently disabled for non-multiple shapes.
    """
    if dim <= pref:
        return dim
    t = (pref // align) * align
    while t >= align:
        if dim % t == 0:
            return t
        t -= align
    return dim


def _gelu_exact(x):
    # Exact (erf-based) GELU matching HF BERT's default 'gelu' (torch nn.GELU),
    # built only from VPU/EUP ops (mul/add/abs/exp/where) so it always lowers.
    # erf via Abramowitz–Stegun 7.1.26, |abs err| < 1.5e-7.  The FFN kernel is
    # MXU-bound, so the extra VPU polynomial is hidden under the matmuls.
    a1, a2, a3, a4, a5 = 0.254829592, -0.284496736, 1.421413741, -1.453152027, 1.061405429
    p = 0.3275911
    z = x * 0.7071067811865476          # x / sqrt(2)
    az = jnp.abs(z)
    t = 1.0 / (1.0 + p * az)
    poly = ((((a5 * t + a4) * t + a3) * t + a2) * t + a1) * t
    erf_abs = 1.0 - poly * jnp.exp(-az * az)
    erf = jnp.where(z >= 0, erf_abs, -erf_abs)
    return 0.5 * x * (1.0 + erf)


# ----------------------------------------------------------------------------
# Kernel 1: tiled matmul + bias (fused Q|K|V projection, LIM linears)
# ----------------------------------------------------------------------------
def _linear_bias_kernel(x_ref, w_ref, b_ref, o_ref, acc_ref, *, compute_dtype):
    @pl.when(pl.program_id(2) == 0)
    def _():
        acc_ref[...] = jnp.zeros_like(acc_ref)

    acc_ref[...] += jnp.dot(x_ref[...].astype(compute_dtype),
                            w_ref[...].astype(compute_dtype),
                            preferred_element_type=jnp.float32)

    @pl.when(pl.program_id(2) == pl.num_programs(2) - 1)
    def _():
        o_ref[...] = (acc_ref[...]
                      + b_ref[...].astype(jnp.float32)).astype(o_ref.dtype)


def linear_bias(x, w, b, *, tm=512, tn=512, tk=512, out_dtype=None,
                compute_dtype=_MXU_DTYPE):
    """out = x @ w + b, tiled (M, N, K) grid with an f32 VMEM accumulator."""
    M, K = x.shape
    N = w.shape[1]
    if out_dtype is None:
        out_dtype = x.dtype
    tm = _pick_tile(M, tm, 8)
    tn = _pick_tile(N, tn, 128)
    tk = _pick_tile(K, tk, 128)
    nbytes = (x.size * x.dtype.itemsize + w.size * w.dtype.itemsize
              + b.size * b.dtype.itemsize
              + M * N * jnp.dtype(out_dtype).itemsize)
    cost = pl.CostEstimate(flops=2 * M * K * N, transcendentals=0,
                           bytes_accessed=nbytes)
    return pl.pallas_call(
        functools.partial(_linear_bias_kernel, compute_dtype=compute_dtype),
        out_shape=jax.ShapeDtypeStruct((M, N), out_dtype),
        grid_spec=pltpu.PrefetchScalarGridSpec(
            num_scalar_prefetch=0,
            grid=(M // tm, N // tn, K // tk),
            in_specs=[pl.BlockSpec((tm, tk), lambda i, j, k: (i, k)),
                      pl.BlockSpec((tk, tn), lambda i, j, k: (k, j)),
                      pl.BlockSpec((1, tn), lambda i, j, k: (0, j))],
            out_specs=pl.BlockSpec((tm, tn), lambda i, j, k: (i, j)),
            scratch_shapes=[pltpu.VMEM((tm, tn), jnp.float32)]),
        compiler_params=pltpu.CompilerParams(
            dimension_semantics=("parallel", "parallel", "arbitrary"),
            vmem_limit_bytes=_VMEM_LIMIT),
        cost_estimate=cost,
    )(x, w, b)


# ----------------------------------------------------------------------------
# Kernel 2: self-attention, head-major layout, one grid step per (batch, head)
# ----------------------------------------------------------------------------
def _attention_kernel(q_ref, k_ref, v_ref, o_ref):
    q = q_ref[0, 0]                                    # (S, Dh)
    k = k_ref[0, 0]
    v = v_ref[0, 0]
    # QK^T by contracting the last dim of both operands (no K transpose /
    # XLU relayout).  1/sqrt(Dh) is folded into Wq at parameter-prep time.
    s = lax.dot_general(q, k, (((1,), (1,)), ((), ())),
                        preferred_element_type=jnp.float32)      # (S, S)
    s = s - jnp.max(s, axis=-1, keepdims=True)
    p = jnp.exp(s)
    p = p * pl.reciprocal(jnp.sum(p, axis=-1, keepdims=True), approx=True)
    ctx = jnp.dot(p.astype(v.dtype), v, preferred_element_type=jnp.float32)
    o_ref[0, 0] = ctx.astype(o_ref.dtype)


def attention(q, k, v):
    """q,k,v: (B, nh, S, Dh) head-major -> ctx (B, nh, S, Dh).

    Grid = (B, nh), both axes 'parallel' (megacore / v7x dual-TC friendly);
    each block is contiguous and lane-dense (no per-head lane slicing).
    """
    B, nh, S, Dh = q.shape
    spec = pl.BlockSpec((1, 1, S, Dh), lambda b, h: (b, h, 0, 0))
    itemsize = q.dtype.itemsize
    cost = pl.CostEstimate(flops=4 * B * nh * S * S * Dh,
                           transcendentals=B * nh * S * S,
                           bytes_accessed=4 * B * nh * S * Dh * itemsize)
    # TODO(synk): flash-style query/KV tiling for long S (keeps the (S,S)
    #             score tile bounded on v7x's 64 MiB VMEM).
    return pl.pallas_call(
        _attention_kernel,
        out_shape=jax.ShapeDtypeStruct((B, nh, S, Dh), q.dtype),
        grid=(B, nh),
        in_specs=[spec, spec, spec],
        out_specs=spec,
        compiler_params=pltpu.CompilerParams(
            dimension_semantics=("parallel", "parallel"),
            vmem_limit_bytes=_VMEM_LIMIT),
        cost_estimate=cost,
    )(q, k, v)


# ----------------------------------------------------------------------------
# Kernel 3: matmul + bias + residual add + layernorm (BertSelfOutput)
# ----------------------------------------------------------------------------
def _matmul_add_ln_kernel(x_ref, w_ref, b_ref, res_ref, g_ref, beta_ref,
                          o_ref, acc_ref, *, eps, compute_dtype):
    @pl.when(pl.program_id(1) == 0)
    def _():
        acc_ref[...] = jnp.zeros_like(acc_ref)

    acc_ref[...] += jnp.dot(x_ref[...].astype(compute_dtype),
                            w_ref[...].astype(compute_dtype),
                            preferred_element_type=jnp.float32)

    @pl.when(pl.program_id(1) == pl.num_programs(1) - 1)
    def _():
        h = (acc_ref[...] + b_ref[...].astype(jnp.float32)
             + res_ref[...].astype(jnp.float32))
        mu = jnp.mean(h, axis=-1, keepdims=True)
        var = jnp.mean((h - mu) ** 2, axis=-1, keepdims=True)
        y = (h - mu) * lax.rsqrt(var + eps) * g_ref[...] + beta_ref[...]
        o_ref[...] = y.astype(o_ref.dtype)


def matmul_add_layernorm(x, w, b, residual, gamma, beta, *, eps=1e-12,
                         tm=512, tk=512):
    M, K = x.shape
    N = w.shape[1]          # layernorm reduces over the full row -> no N tiling
    tm = _pick_tile(M, tm, 8)
    tk = _pick_tile(K, tk, 128)
    nbytes = (x.size * x.dtype.itemsize + w.size * w.dtype.itemsize
              + 2 * M * N * residual.dtype.itemsize)
    cost = pl.CostEstimate(flops=2 * M * K * N + 8 * M * N, transcendentals=M,
                           bytes_accessed=nbytes)
    return pl.pallas_call(
        functools.partial(_matmul_add_ln_kernel, eps=eps,
                          compute_dtype=_MXU_DTYPE),
        out_shape=jax.ShapeDtypeStruct((M, N), residual.dtype),
        grid_spec=pltpu.PrefetchScalarGridSpec(
            num_scalar_prefetch=0,
            grid=(M // tm, K // tk),
            in_specs=[pl.BlockSpec((tm, tk), lambda i, k: (i, k)),
                      pl.BlockSpec((tk, N), lambda i, k: (k, 0)),
                      pl.BlockSpec((1, N), lambda i, k: (0, 0)),
                      pl.BlockSpec((tm, N), lambda i, k: (i, 0)),
                      pl.BlockSpec((1, N), lambda i, k: (0, 0)),
                      pl.BlockSpec((1, N), lambda i, k: (0, 0))],
            out_specs=pl.BlockSpec((tm, N), lambda i, k: (i, 0)),
            scratch_shapes=[pltpu.VMEM((tm, N), jnp.float32)]),
        compiler_params=pltpu.CompilerParams(
            dimension_semantics=("parallel", "arbitrary"),
            vmem_limit_bytes=_VMEM_LIMIT),
        cost_estimate=cost,
    )(x, w, b, residual, gamma, beta)


# ----------------------------------------------------------------------------
# Kernel 4: fused FFN (Wi + GELU + Wo2 + bias + residual + LN), tiled over I
# ----------------------------------------------------------------------------
def _ffn_kernel(x_ref, wi_ref, bi_ref, wo_ref, bo_ref, g_ref, beta_ref,
                o_ref, acc_ref, *, eps, compute_dtype):
    @pl.when(pl.program_id(1) == 0)
    def _():
        acc_ref[...] = jnp.zeros_like(acc_ref)

    x = x_ref[...]
    inter = (jnp.dot(x.astype(compute_dtype), wi_ref[...].astype(compute_dtype),
                     preferred_element_type=jnp.float32)
             + bi_ref[...].astype(jnp.float32))
    inter = _gelu_exact(inter)                  # (tm, ti) never leaves VMEM
    acc_ref[...] += jnp.dot(inter.astype(compute_dtype),
                            wo_ref[...].astype(compute_dtype),
                            preferred_element_type=jnp.float32)

    @pl.when(pl.program_id(1) == pl.num_programs(1) - 1)
    def _():
        h = (acc_ref[...] + bo_ref[...].astype(jnp.float32)
             + x.astype(jnp.float32))
        mu = jnp.mean(h, axis=-1, keepdims=True)
        var = jnp.mean((h - mu) ** 2, axis=-1, keepdims=True)
        o_ref[...] = ((h - mu) * lax.rsqrt(var + eps) * g_ref[...]
                      + beta_ref[...]).astype(o_ref.dtype)


def ffn_add_layernorm(x, wi, bi, wo, bo, gamma, beta, *, eps=1e-12,
                      tm=256, ti=512):
    """Both FFN matmuls, exact GELU and the LN epilogue fused; the intermediate
    dimension I is tiled as a reduction axis so only (H, ti)/(ti, H) weight
    slabs are VMEM-resident (fits v7x's 64 MiB even at BERT-large)."""
    M, H = x.shape
    I = wi.shape[1]
    tm = _pick_tile(M, tm, 8)
    ti = _pick_tile(I, ti, 128)
    nbytes = (x.size * x.dtype.itemsize + wi.size * wi.dtype.itemsize
              + wo.size * wo.dtype.itemsize + M * H * x.dtype.itemsize)
    cost = pl.CostEstimate(flops=4 * M * H * I + 10 * M * H,
                           transcendentals=M * I + M, bytes_accessed=nbytes)
    return pl.pallas_call(
        functools.partial(_ffn_kernel, eps=eps, compute_dtype=_MXU_DTYPE),
        out_shape=jax.ShapeDtypeStruct((M, H), x.dtype),
        grid_spec=pltpu.PrefetchScalarGridSpec(
            num_scalar_prefetch=0,
            grid=(M // tm, I // ti),
            in_specs=[pl.BlockSpec((tm, H), lambda i, j: (i, 0)),
                      pl.BlockSpec((H, ti), lambda i, j: (0, j)),
                      pl.BlockSpec((1, ti), lambda i, j: (0, j)),
                      pl.BlockSpec((ti, H), lambda i, j: (j, 0)),
                      pl.BlockSpec((1, H), lambda i, j: (0, 0)),
                      pl.BlockSpec((1, H), lambda i, j: (0, 0)),
                      pl.BlockSpec((1, H), lambda i, j: (0, 0))],
            out_specs=pl.BlockSpec((tm, H), lambda i, j: (i, 0)),
            scratch_shapes=[pltpu.VMEM((tm, H), jnp.float32)]),
        compiler_params=pltpu.CompilerParams(
            dimension_semantics=("parallel", "arbitrary"),
            vmem_limit_bytes=_VMEM_LIMIT),
        cost_estimate=cost,
    )(x, wi, bi, wo, bo, gamma, beta)


# ----------------------------------------------------------------------------
# LIM LinearLayer + InverseLinearLayer round-trip (two tiled matmul kernels)
# ----------------------------------------------------------------------------
def lim_roundtrip(t, w_t, b, w_inv_t, b_inv):
    # y = t @ W^T + b ;  z = (y - b) @ inv(W)^T  ==  y @ inv(W)^T + (-b @ inv(W)^T)
    # (b_inv pre-folded once).  Kept as real matmuls (not elided) and run on the
    # f32 MXU path so the round-trip numerics match the reference.
    y = linear_bias(t, w_t, b, compute_dtype=jnp.float32)
    return linear_bias(y, w_inv_t, b_inv, compute_dtype=jnp.float32)


# ----------------------------------------------------------------------------
# layers[0]: BERT encoder layer (self-attention + FFN), fused kernel pipeline
# ----------------------------------------------------------------------------
def bert_layer(hidden_states, p, num_heads):
    B, S, H = hidden_states.shape
    Dh = H // num_heads
    M = B * S
    x = hidden_states.reshape(M, H)                       # free (contiguous)

    # 1. fused Q|K|V projection; bf16 activation halves the biggest HBM hop.
    qkv = linear_bias(x, p["w_qkv"], p["b_qkv"], out_dtype=_MXU_DTYPE)   # (M, 3H)

    # 2. head-major relayout at the JAX level -> lane-dense (1,1,S,Dh) blocks
    #    and a (B, nh) parallel grid inside the attention kernel.
    qkv = qkv.reshape(B, S, 3, num_heads, Dh).transpose(2, 0, 3, 1, 4)   # (3,B,nh,S,Dh)
    ctx = attention(qkv[0], qkv[1], qkv[2])                              # (B,nh,S,Dh)
    ctx = ctx.transpose(0, 2, 1, 3).reshape(M, H)

    # 3. out-proj + bias + residual + layernorm (residual / LN kept in f32).
    h1 = matmul_add_layernorm(ctx, p["wo"], p["bo"], x, p["ln1_g"], p["ln1_b"])

    # 4. FFN: Wi + GELU + Wo2 + bias + residual + layernorm, tiled over I.
    h2 = ffn_add_layernorm(h1, p["wi"], p["bi"], p["wo2"], p["bo2"],
                           p["ln2_g"], p["ln2_b"])
    return (h2.reshape(B, S, H),)                         # BertLayer-style tuple


# ----------------------------------------------------------------------------
# self.layer == SequentialLayers(BertLayer, LinearLayer, InverseLinearLayer)
# ----------------------------------------------------------------------------
def sequential_layers_forward(hidden_states, params, target_dims, num_heads):
    args = bert_layer(hidden_states, params["bert"], num_heads)

    output = args[0]
    original_shape = output.shape
    rest = args[1:]
    flat = output.reshape(original_shape[0], -1)          # (B, S*H)
    start, end = target_dims["start"], target_dims["end"]
    target = flat[:, start:end]

    z = lim_roundtrip(target, params["lim"]["w_t"], params["lim"]["b"],
                      params["lim"]["w_inv_t"], params["lim"]["b_inv"])

    # In-place style re-insertion: no full concatenate rewrite of (B, S*H).
    new_flat = lax.dynamic_update_slice(flat, z.astype(flat.dtype), (0, start))
    return (new_flat.reshape(original_shape), *rest)


# ----------------------------------------------------------------------------
# LIMBertLayer.forward equivalent
# ----------------------------------------------------------------------------
def lim_bert_layer_forward(hidden_states, params, *, target_dims, num_heads,
                           layer_num=0, final_layer_num=0, attention_mask=None,
                           head_mask=None, encoder_hidden_states=None,
                           encoder_attention_mask=None, past_key_values=None,
                           use_cache=None, output_attentions=False,
                           output_hidden_states=False, return_dict=True):
    # TODO(synk): mask / cross-attention / cache / checkpointing paths omitted.
    layer_outputs = sequential_layers_forward(hidden_states, params,
                                              target_dims, num_heads)
    hidden_states = layer_outputs[0]
    if layer_num == final_layer_num:
        return (hidden_states,)      # last_hidden_state
    return (hidden_states, layer_num + 1, attention_mask, head_mask,
            encoder_hidden_states, encoder_attention_mask, past_key_values,
            use_cache, output_attentions, output_hidden_states, return_dict)


# ----------------------------------------------------------------------------
# deterministic parameter init (weights pre-fused / pre-scaled once, for free)
# ----------------------------------------------------------------------------
def init_params(key, hidden, intermediate, target_width, num_heads):
    ks = jax.random.split(key, 16)
    f32 = jnp.float32

    def w(k, shape):
        return jax.random.normal(k, shape, f32) * 0.02

    head_dim = hidden // num_heads
    scale = 1.0 / (head_dim ** 0.5)
    wq, wk, wv = (w(ks[0], (hidden, hidden)), w(ks[1], (hidden, hidden)),
                  w(ks[2], (hidden, hidden)))
    bq = jnp.zeros((1, hidden), f32)
    bk = jnp.zeros((1, hidden), f32)
    bv = jnp.zeros((1, hidden), f32)
    # Fold 1/sqrt(Dh) into Q and fuse Q|K|V into one (H, 3H) weight so the
    # projection is a single tiled MXU kernel.  Large projection/FFN weights
    # are stored bf16 (mixed precision; f32 accumulation inside the kernels).
    w_qkv = jnp.concatenate([wq * scale, wk, wv], axis=1)
    b_qkv = jnp.concatenate([bq * scale, bk, bv], axis=1)

    bert = dict(
        w_qkv=w_qkv.astype(_MXU_DTYPE), b_qkv=b_qkv,
        wo=w(ks[3], (hidden, hidden)).astype(_MXU_DTYPE),
        bo=jnp.zeros((1, hidden), f32),
        wi=w(ks[4], (hidden, intermediate)).astype(_MXU_DTYPE),
        bi=jnp.zeros((1, intermediate), f32),
        wo2=w(ks[5], (intermediate, hidden)).astype(_MXU_DTYPE),
        bo2=jnp.zeros((1, hidden), f32),
        ln1_g=jnp.ones((1, hidden), f32), ln1_b=jnp.zeros((1, hidden), f32),
        ln2_g=jnp.ones((1, hidden), f32), ln2_b=jnp.zeros((1, hidden), f32),
    )

    # LinearLayer weight: orthogonal so its inverse exists and is well-conditioned.
    W, _ = jnp.linalg.qr(jax.random.normal(ks[6], (target_width, target_width), f32))
    b = jax.random.normal(ks[7], (1, target_width), f32) * 0.02
    W_inv = jnp.linalg.inv(W)
    lim = dict(
        w_t=W.T,                     # y = x @ W.T + b   (torch nn.Linear semantics)
        b=b,
        w_inv_t=W_inv.T,             # x = (y - b) @ inv(W).T
        b_inv=-(b @ W_inv.T),        # pre-folded so the inverse is matmul+bias too
    )
    return dict(bert=bert, lim=lim)


# ----------------------------------------------------------------------------
# pure-jnp f32 reference (loose numerical check of the kernel pipeline)
# ----------------------------------------------------------------------------
def _reference_forward(hidden_states, params, target_dims, num_heads):
    B, S, H = hidden_states.shape
    Dh = H // num_heads
    p = params["bert"]
    x = hidden_states.reshape(B * S, H).astype(jnp.float32)

    def ln(h, g, bb, eps=1e-12):
        mu = h.mean(-1, keepdims=True)
        var = ((h - mu) ** 2).mean(-1, keepdims=True)
        return (h - mu) * lax.rsqrt(var + eps) * g + bb

    qkv = x @ p["w_qkv"].astype(jnp.float32) + p["b_qkv"]
    qkv = qkv.reshape(B, S, 3, num_heads, Dh).transpose(2, 0, 3, 1, 4)
    q, k, v = qkv[0], qkv[1], qkv[2]                       # (B, nh, S, Dh)
    s = jnp.einsum("bhqd,bhkd->bhqk", q, k)                # 1/sqrt(Dh) pre-folded
    a = jax.nn.softmax(s, axis=-1)
    ctx = jnp.einsum("bhqk,bhkd->bhqd", a, v)
    ctx = ctx.transpose(0, 2, 1, 3).reshape(B * S, H)
    h1 = ln(ctx @ p["wo"].astype(jnp.float32) + p["bo"] + x, p["ln1_g"], p["ln1_b"])
    inter = jax.nn.gelu(h1 @ p["wi"].astype(jnp.float32) + p["bi"],
                        approximate=False)
    h2 = ln(inter @ p["wo2"].astype(jnp.float32) + p["bo2"] + h1,
            p["ln2_g"], p["ln2_b"])
    flat = h2.reshape(B, -1)
    st, en = target_dims["start"], target_dims["end"]
    lim = params["lim"]
    y = flat[:, st:en] @ lim["w_t"] + lim["b"]
    z = (y - lim["b"]) @ lim["w_inv_t"]
    flat = lax.dynamic_update_slice(flat, z, (0, st))
    return flat.reshape(B, S, H)


# ----------------------------------------------------------------------------
if __name__ == "__main__":
    B, S, H = 2, 8, 32
    NUM_HEADS = 2
    INTERMEDIATE = 64
    target_dims = {"start": 64, "end": 192}   # slice of the (B, S*H=256) flat axis
    TARGET_W = target_dims["end"] - target_dims["start"]

    key = jax.random.PRNGKey(0)
    k_x, k_p = jax.random.split(key)
    params = init_params(k_p, H, INTERMEDIATE, TARGET_W, NUM_HEADS)
    x = jax.random.normal(k_x, (B, S, H), jnp.float32)

    fwd = jax.jit(functools.partial(lim_bert_layer_forward,
                                    target_dims=target_dims,
                                    num_heads=NUM_HEADS,
                                    layer_num=0, final_layer_num=0))
    out = fwd(x, params)
    hidden_out = jax.block_until_ready(out[0])

    assert hidden_out.shape == (B, S, H)
    assert bool(jnp.all(jnp.isfinite(hidden_out)))

    # Loose check vs. the f32 reference (bf16 MXU operands + approx reciprocal
    # + erf polynomial are the only differences).
    ref = _reference_forward(x, params, target_dims, NUM_HEADS)
    max_err = float(jnp.max(jnp.abs(hidden_out.astype(jnp.float32) - ref)))
    assert max_err < 5e-2, f"mismatch vs f32 reference: max abs err {max_err}"
    print("KERNEL_OK")
</pallas_src>

<mosaic_0001>
module attributes {stable_mosaic.version = 11 : i64} {
  func.func @_linear_bias_kernel(%arg0: i32, %arg1: i32, %arg2: i32, %arg3: memref<16x32xf32, #tpu.memory_space<vmem>>, %arg4: memref<32x96xbf16, #tpu.memory_space<vmem>>, %arg5: memref<1x96xf32, #tpu.memory_space<vmem>>, %arg6: memref<16x96xbf16, #tpu.memory_space<vmem>>, %arg7: memref<16x96xf32, #tpu.memory_space<vmem>>) attributes {dimension_semantics = [#tpu.dimension_semantics<parallel>, #tpu.dimension_semantics<parallel>, #tpu.dimension_semantics<arbitrary>], iteration_bounds = array<i64: 1, 1, 1>, scalar_prefetch = 0 : i64, scratch_operands = 1 : i64, tpu.core_type = #tpu.core_type<tc>, window_params = [{transform_indices = @transform_0, window_bounds = array<i64: 16, 32>}, {transform_indices = @transform_1, window_bounds = array<i64: 32, 96>}, {transform_indices = @transform_2, window_bounds = array<i64: 1, 96>}, {transform_indices = @transform_3, window_bounds = array<i64: 16, 96>}]} {
    %c0_i32 = arith.constant 0 : i32
    %0 = arith.cmpi eq, %arg2, %c0_i32 : i32
    %1 = arith.extui %0 : i1 to i32
    %c0_i32_0 = arith.constant 0 : i32
    %2 = arith.cmpi ne, %1, %c0_i32_0 : i32
    scf.if %2 {
      %cst_10 = arith.constant 0.000000e+00 : f32
      %13 = vector.broadcast %cst_10 : f32 to vector<16x96xf32>
      %c0_11 = arith.constant 0 : index
      %c0_12 = arith.constant 0 : index
      %14 = vector.load %arg7[%c0_11, %c0_12] : memref<16x96xf32, #tpu.memory_space<vmem>>, vector<16x96xf32>
      tpu.vector_store %arg7[%c0_11, %c0_12], %13 {strides = array<i32>} : memref<16x96xf32, #tpu.memory_space<vmem>>, vector<16x96xf32>,
    } else {
    }
    %c0 = arith.constant 0 : index
    %c0_1 = arith.constant 0 : index
    %3 = vector.load %arg7[%c0, %c0_1] : memref<16x96xf32, #tpu.memory_space<vmem>>, vector<16x96xf32>
    %c0_2 = arith.constant 0 : index
    %c0_3 = arith.constant 0 : index
    %4 = vector.load %arg3[%c0_2, %c0_3] : memref<16x32xf32, #tpu.memory_space<vmem>>, vector<16x32xf32>
    %5 = arith.truncf %4 : vector<16x32xf32> to vector<16x32xbf16>
    %c0_4 = arith.constant 0 : index
    %c0_5 = arith.constant 0 : index
    %6 = vector.load %arg4[%c0_4, %c0_5] : memref<32x96xbf16, #tpu.memory_space<vmem>>, vector<32x96xbf16>
    %cst = arith.constant dense<0.000000e+00> : vector<16x96xf32>
    %7 = tpu.matmul %5, %6, %cst {dimension_numbers = #tpu.dot_dimension_numbers<[1], [0], [0], [1], [0, 0, 1, 1], [], []>} : vector<16x32xbf16>, vector<32x96xbf16>, vector<16x96xf32> -> vector<16x96xf32>
    %8 = arith.addf %3, %7 : vector<16x96xf32>
    %c0_6 = arith.constant 0 : index
    %c0_7 = arith.constant 0 : index
    %9 = vector.load %arg7[%c0_6, %c0_7] : memref<16x96xf32, #tpu.memory_space<vmem>>, vector<16x96xf32>
    tpu.vector_store %arg7[%c0_6, %c0_7], %8 {strides = array<i32>} : memref<16x96xf32, #tpu.memory_space<vmem>>, vector<16x96xf32>,
    %c0_i32_8 = arith.constant 0 : i32
    %10 = arith.cmpi eq, %arg2, %c0_i32_8 : i32
    %11 = arith.extui %10 : i1 to i32
    %c0_i32_9 = arith.constant 0 : i32
    %12 = arith.cmpi ne, %11, %c0_i32_9 : i32
    scf.if %12 {
      %c0_10 = arith.constant 0 : index
      %c0_11 = arith.constant 0 : index
      %13 = vector.load %arg7[%c0_10, %c0_11] : memref<16x96xf32, #tpu.memory_space<vmem>>, vector<16x96xf32>
      %c0_12 = arith.constant 0 : index
      %c0_13 = arith.constant 0 : index
      %14 = vector.load %arg5[%c0_12, %c0_13] : memref<1x96xf32, #tpu.memory_space<vmem>>, vector<1x96xf32>
      %15 = vector.broadcast %14 : vector<1x96xf32> to vector<16x96xf32>
      %16 = arith.addf %13, %15 : vector<16x96xf32>
      %17 = arith.truncf %16 : vector<16x96xf32> to vector<16x96xbf16>
      %c0_14 = arith.constant 0 : index
      %c0_15 = arith.constant 0 : index
      %18 = vector.load %arg6[%c0_14, %c0_15] : memref<16x96xbf16, #tpu.memory_space<vmem>>, vector<16x96xbf16>
      tpu.vector_store %arg6[%c0_14, %c0_15], %17 {strides = array<i32>} : memref<16x96xbf16, #tpu.memory_space<vmem>>, vector<16x96xbf16>,
    } else {
    }
    return
  }
  func.func @transform_0(%arg0: i32, %arg1: i32, %arg2: i32) -> (i32, i32) {
    %c0_i32 = arith.constant 0 : i32
    return %arg0, %arg2 : i32, i32
  }
  func.func @transform_1(%arg0: i32, %arg1: i32, %arg2: i32) -> (i32, i32) {
    %c0_i32 = arith.constant 0 : i32
    return %arg2, %arg1 : i32, i32
  }
  func.func @transform_2(%arg0: i32, %arg1: i32, %arg2: i32) -> (i32, i32) {
    %c0_i32 = arith.constant 0 : i32
    %c0_i32_0 = arith.constant 0 : i32
    return %c0_i32, %arg1 : i32, i32
  }
  func.func @transform_3(%arg0: i32, %arg1: i32, %arg2: i32) -> (i32, i32) {
    %c0_i32 = arith.constant 0 : i32
    return %arg0, %arg1 : i32, i32
  }
}

module attributes {stable_mosaic.version = 11 : i64} {
  func.func @_attention_kernel(%arg0: i32, %arg1: i32, %arg2: memref<1x1x8x16xbf16, #tpu.memory_space<vmem>>, %arg3: memref<1x1x8x16xbf16, #tpu.memory_space<vmem>>, %arg4: memref<1x1x8x16xbf16, #tpu.memory_space<vmem>>, %arg5: memref<1x1x8x16xbf16, #tpu.memory_space<vmem>>) attributes {dimension_semantics = [#tpu.dimension_semantics<parallel>, #tpu.dimension_semantics<parallel>], iteration_bounds = array<i64: 2, 2>, scalar_prefetch = 0 : i64, scratch_operands = 0 : i64, tpu.core_type = #tpu.core_type<tc>, window_params = [{transform_indices = @transform_0, window_bounds = array<i64: 1, 1, 8, 16>}, {transform_indices = @transform_1, window_bounds = array<i64: 1, 1, 8, 16>}, {transform_indices = @transform_2, window_bounds = array<i64: 1, 1, 8, 16>}, {transform_indices = @transform_3, window_bounds = array<i64: 1, 1, 8, 16>}]} {
    %c0 = arith.constant 0 : index
    %c0_0 = arith.constant 0 : index
    %c0_1 = arith.constant 0 : index
    %c0_2 = arith.constant 0 : index
    %0 = vector.load %arg2[%c0, %c0_0, %c0_1, %c0_2] : memref<1x1x8x16xbf16, #tpu.memory_space<vmem>>, vector<1x1x8x16xbf16>
    %1 = vector.shape_cast %0 : vector<1x1x8x16xbf16> to vector<8x16xbf16>
    %c0_3 = arith.constant 0 : index
    %c0_4 = arith.constant 0 : index
    %c0_5 = arith.constant 0 : index
    %c0_6 = arith.constant 0 : index
    %2 = vector.load %arg3[%c0_3, %c0_4, %c0_5, %c0_6] : memref<1x1x8x16xbf16, #tpu.memory_space<vmem>>, vector<1x1x8x16xbf16>
    %3 = vector.shape_cast %2 : vector<1x1x8x16xbf16> to vector<8x16xbf16>
    %c0_7 = arith.constant 0 : index
    %c0_8 = arith.constant 0 : index
    %c0_9 = arith.constant 0 : index
    %c0_10 = arith.constant 0 : index
    %4 = vector.load %arg4[%c0_7, %c0_8, %c0_9, %c0_10] : memref<1x1x8x16xbf16, #tpu.memory_space<vmem>>, vector<1x1x8x16xbf16>
    %5 = vector.shape_cast %4 : vector<1x1x8x16xbf16> to vector<8x16xbf16>
    %cst = arith.constant dense<0.000000e+00> : vector<8x8xf32>
    %6 = tpu.matmul %1, %3, %cst {dimension_numbers = #tpu.dot_dimension_numbers<[1], [1], [0], [0], [0, 0, 1, 0], [], []>} : vector<8x16xbf16>, vector<8x16xbf16>, vector<8x8xf32> -> vector<8x8xf32>
    %cst_11 = arith.constant dense<0xFF800000> : vector<8xf32>
    %7 = vector.multi_reduction <maximumf>, %6, %cst_11 [1] : vector<8x8xf32> to vector<8xf32>
    %8 = vector.shape_cast %7 : vector<8xf32> to vector<8x1xf32>
    %9 = vector.broadcast %8 : vector<8x1xf32> to vector<8x8xf32>
    %10 = arith.subf %6, %9 : vector<8x8xf32>
    %11 = math.exp %10 : vector<8x8xf32>
    %cst_12 = arith.constant dense<0.000000e+00> : vector<8xf32>
    %12 = vector.multi_reduction <add>, %11, %cst_12 [1] : vector<8x8xf32> to vector<8xf32>
    %13 = vector.shape_cast %12 : vector<8xf32> to vector<8x1xf32>
    %14 = tpu.reciprocal %13 {approx = true} : vector<8x1xf32> -> vector<8x1xf32>
    %15 = vector.broadcast %14 : vector<8x1xf32> to vector<8x8xf32>
    %16 = arith.mulf %11, %15 : vector<8x8xf32>
    %17 = arith.truncf %16 : vector<8x8xf32> to vector<8x8xbf16>
    %cst_13 = arith.constant dense<0.000000e+00> : vector<8x16xf32>
    %18 = tpu.matmul %17, %5, %cst_13 {dimension_numbers = #tpu.dot_dimension_numbers<[1], [0], [0], [1], [0, 0, 1, 1], [], []>} : vector<8x8xbf16>, vector<8x16xbf16>, vector<8x16xf32> -> vector<8x16xf32>
    %19 = arith.truncf %18 : vector<8x16xf32> to vector<8x16xbf16>
    %c0_14 = arith.constant 0 : index
    %c0_15 = arith.constant 0 : index
    %c0_16 = arith.constant 0 : index
    %c0_17 = arith.constant 0 : index
    %20 = vector.load %arg5[%c0_14, %c0_15, %c0_16, %c0_17] : memref<1x1x8x16xbf16, #tpu.memory_space<vmem>>, vector<1x1x8x16xbf16>
    %21 = vector.shape_cast %20 : vector<1x1x8x16xbf16> to vector<8x16xbf16>
    %22 = vector.shape_cast %19 : vector<8x16xbf16> to vector<1x1x8x16xbf16>
    tpu.vector_store %arg5[%c0_14, %c0_15, %c0_16, %c0_17], %22 {strides = array<i32>} : memref<1x1x8x16xbf16, #tpu.memory_space<vmem>>, vector<1x1x8x16xbf16>,
    return
  }
  func.func @transform_0(%arg0: i32, %arg1: i32) -> (i32, i32, i32, i32) {
    %c0_i32 = arith.constant 0 : i32
    %c0_i32_0 = arith.constant 0 : i32
    %c0_i32_1 = arith.constant 0 : i32
    return %arg0, %arg1, %c0_i32, %c0_i32_0 : i32, i32, i32, i32
  }
  func.func @transform_1(%arg0: i32, %arg1: i32) -> (i32, i32, i32, i32) {
    %c0_i32 = arith.constant 0 : i32
    %c0_i32_0 = arith.constant 0 : i32
    %c0_i32_1 = arith.constant 0 : i32
    return %arg0, %arg1, %c0_i32, %c0_i32_0 : i32, i32, i32, i32
  }
  func.func @transform_2(%arg0: i32, %arg1: i32) -> (i32, i32, i32, i32) {
    %c0_i32 = arith.constant 0 : i32
    %c0_i32_0 = arith.constant 0 : i32
    %c0_i32_1 = arith.constant 0 : i32
    return %arg0, %arg1, %c0_i32, %c0_i32_0 : i32, i32, i32, i32
  }
  func.func @transform_3(%arg0: i32, %arg1: i32) -> (i32, i32, i32, i32) {
    %c0_i32 = arith.constant 0 : i32
    %c0_i32_0 = arith.constant 0 : i32
    %c0_i32_1 = arith.constant 0 : i32
    return %arg0, %arg1, %c0_i32, %c0_i32_0 : i32, i32, i32, i32
  }
}

module attributes {stable_mosaic.version = 11 : i64} {
  func.func @_matmul_add_ln_kernel(%arg0: i32, %arg1: i32, %arg2: memref<16x32xbf16, #tpu.memory_space<vmem>>, %arg3: memref<32x32xbf16, #tpu.memory_space<vmem>>, %arg4: memref<1x32xf32, #tpu.memory_space<vmem>>, %arg5: memref<16x32xf32, #tpu.memory_space<vmem>>, %arg6: memref<1x32xf32, #tpu.memory_space<vmem>>, %arg7: memref<1x32xf32, #tpu.memory_space<vmem>>, %arg8: memref<16x32xf32, #tpu.memory_space<vmem>>, %arg9: memref<16x32xf32, #tpu.memory_space<vmem>>) attributes {dimension_semantics = [#tpu.dimension_semantics<parallel>, #tpu.dimension_semantics<arbitrary>], iteration_bounds = array<i64: 1, 1>, scalar_prefetch = 0 : i64, scratch_operands = 1 : i64, tpu.core_type = #tpu.core_type<tc>, window_params = [{transform_indices = @transform_0, window_bounds = array<i64: 16, 32>}, {transform_indices = @transform_1, window_bounds = array<i64: 32, 32>}, {pipeline_mode = #tpu.pipeline_mode<synchronous>, transform_indices = @transform_2, window_bounds = array<i64: 1, 32>}, {transform_indices = @transform_3, window_bounds = array<i64: 16, 32>}, {pipeline_mode = #tpu.pipeline_mode<synchronous>, transform_indices = @transform_4, window_bounds = array<i64: 1, 32>}, {pipeline_mode = #tpu.pipeline_mode<synchronous>, transform_indices = @transform_5, window_bounds = array<i64: 1, 32>}, {transform_indices = @transform_6, window_bounds = array<i64: 16, 32>}]} {
    %c0_i32 = arith.constant 0 : i32
    %0 = arith.cmpi eq, %arg1, %c0_i32 : i32
    %1 = arith.extui %0 : i1 to i32
    %c0_i32_0 = arith.constant 0 : i32
    %2 = arith.cmpi ne, %1, %c0_i32_0 : i32
    scf.if %2 {
      %cst_10 = arith.constant 0.000000e+00 : f32
      %12 = vector.broadcast %cst_10 : f32 to vector<16x32xf32>
      %c0_11 = arith.constant 0 : index
      %c0_12 = arith.constant 0 : index
      %13 = vector.load %arg9[%c0_11, %c0_12] : memref<16x32xf32, #tpu.memory_space<vmem>>, vector<16x32xf32>
      tpu.vector_store %arg9[%c0_11, %c0_12], %12 {strides = array<i32>} : memref<16x32xf32, #tpu.memory_space<vmem>>, vector<16x32xf32>,
    } else {
    }
    %c0 = arith.constant 0 : index
    %c0_1 = arith.constant 0 : index
    %3 = vector.load %arg9[%c0, %c0_1] : memref<16x32xf32, #tpu.memory_space<vmem>>, vector<16x32xf32>
    %c0_2 = arith.constant 0 : index
    %c0_3 = arith.constant 0 : index
    %4 = vector.load %arg2[%c0_2, %c0_3] : memref<16x32xbf16, #tpu.memory_space<vmem>>, vector<16x32xbf16>
    %c0_4 = arith.constant 0 : index
    %c0_5 = arith.constant 0 : index
    %5 = vector.load %arg3[%c0_4, %c0_5] : memref<32x32xbf16, #tpu.memory_space<vmem>>, vector<32x32xbf16>
    %cst = arith.constant dense<0.000000e+00> : vector<16x32xf32>
    %6 = tpu.matmul %4, %5, %cst {dimension_numbers = #tpu.dot_dimension_numbers<[1], [0], [0], [1], [0, 0, 1, 1], [], []>} : vector<16x32xbf16>, vector<32x32xbf16>, vector<16x32xf32> -> vector<16x32xf32>
    %7 = arith.addf %3, %6 : vector<16x32xf32>
    %c0_6 = arith.constant 0 : index
    %c0_7 = arith.constant 0 : index
    %8 = vector.load %arg9[%c0_6, %c0_7] : memref<16x32xf32, #tpu.memory_space<vmem>>, vector<16x32xf32>
    tpu.vector_store %arg9[%c0_6, %c0_7], %7 {strides = array<i32>} : memref<16x32xf32, #tpu.memory_space<vmem>>, vector<16x32xf32>,
    %c0_i32_8 = arith.constant 0 : i32
    %9 = arith.cmpi eq, %arg1, %c0_i32_8 : i32
    %10 = arith.extui %9 : i1 to i32
    %c0_i32_9 = arith.constant 0 : i32
    %11 = arith.cmpi ne, %10, %c0_i32_9 : i32
    scf.if %11 {
      %c0_10 = arith.constant 0 : index
      %c0_11 = arith.constant 0 : index
      %12 = vector.load %arg9[%c0_10, %c0_11] : memref<16x32xf32, #tpu.memory_space<vmem>>, vector<16x32xf32>
      %c0_12 = arith.constant 0 : index
      %c0_13 = arith.constant 0 : index
      %13 = vector.load %arg4[%c0_12, %c0_13] : memref<1x32xf32, #tpu.memory_space<vmem>>, vector<1x32xf32>
      %14 = vector.broadcast %13 : vector<1x32xf32> to vector<16x32xf32>
      %15 = arith.addf %12, %14 : vector<16x32xf32>
      %c0_14 = arith.constant 0 : index
      %c0_15 = arith.constant 0 : index
      %16 = vector.load %arg5[%c0_14, %c0_15] : memref<16x32xf32, #tpu.memory_space<vmem>>, vector<16x32xf32>
      %17 = arith.addf %15, %16 : vector<16x32xf32>
      %cst_16 = arith.constant dense<0.000000e+00> : vector<16xf32>
      %18 = vector.multi_reduction <add>, %17, %cst_16 [1] : vector<16x32xf32> to vector<16xf32>
      %19 = vector.shape_cast %18 : vector<16xf32> to vector<16x1xf32>
      %cst_17 = arith.constant 3.200000e+01 : f32
      %20 = vector.broadcast %cst_17 : f32 to vector<16x1xf32>
      %21 = arith.divf %19, %20 : vector<16x1xf32>
      %22 = vector.broadcast %21 : vector<16x1xf32> to vector<16x32xf32>
      %23 = arith.subf %17, %22 : vector<16x32xf32>
      %24 = arith.mulf %23, %23 : vector<16x32xf32>
      %cst_18 = arith.constant dense<0.000000e+00> : vector<16xf32>
      %25 = vector.multi_reduction <add>, %24, %cst_18 [1] : vector<16x32xf32> to vector<16xf32>
      %26 = vector.shape_cast %25 : vector<16xf32> to vector<16x1xf32>
      %cst_19 = arith.constant 3.200000e+01 : f32
      %27 = vector.broadcast %cst_19 : f32 to vector<16x1xf32>
      %28 = arith.divf %26, %27 : vector<16x1xf32>
      %29 = vector.broadcast %21 : vector<16x1xf32> to vector<16x32xf32>
      %30 = arith.subf %17, %29 : vector<16x32xf32>
      %cst_20 = arith.constant 9.99999996E-13 : f32
      %31 = vector.broadcast %cst_20 : f32 to vector<16x1xf32>
      %32 = arith.addf %28, %31 : vector<16x1xf32>
      %33 = math.rsqrt %32 : vector<16x1xf32>
      %34 = vector.broadcast %33 : vector<16x1xf32> to vector<16x32xf32>
      %35 = arith.mulf %30, %34 : vector<16x32xf32>
      %c0_21 = arith.constant 0 : index
      %c0_22 = arith.constant 0 : index
      %36 = vector.load %arg6[%c0_21, %c0_22] : memref<1x32xf32, #tpu.memory_space<vmem>>, vector<1x32xf32>
      %37 = vector.broadcast %36 : vector<1x32xf32> to vector<16x32xf32>
      %38 = arith.mulf %35, %37 : vector<16x32xf32>
      %c0_23 = arith.constant 0 : index
      %c0_24 = arith.constant 0 : index
      %39 = vector.load %arg7[%c0_23, %c0_24] : memref<1x32xf32, #tpu.memory_space<vmem>>, vector<1x32xf32>
      %40 = vector.broadcast %39 : vector<1x32xf32> to vector<16x32xf32>
      %41 = arith.addf %38, %40 : vector<16x32xf32>
      %c0_25 = arith.constant 0 : index
      %c0_26 = arith.constant 0 : index
      %42 = vector.load %arg8[%c0_25, %c0_26] : memref<16x32xf32, #tpu.memory_space<vmem>>, vector<16x32xf32>
      tpu.vector_store %arg8[%c0_25, %c0_26], %41 {strides = array<i32>} : memref<16x32xf32, #tpu.memory_space<vmem>>, vector<16x32xf32>,
    } else {
    }
    return
  }
  func.func @transform_0(%arg0: i32, %arg1: i32) -> (i32, i32) {
    %c0_i32 = arith.constant 0 : i32
    return %arg0, %arg1 : i32, i32
  }
  func.func @transform_1(%arg0: i32, %arg1: i32) -> (i32, i32) {
    %c0_i32 = arith.constant 0 : i32
    %c0_i32_0 = arith.constant 0 : i32
    return %arg1, %c0_i32 : i32, i32
  }
  func.func @transform_2(%arg0: i32, %arg1: i32) -> (i32, i32) {
    %c0_i32 = arith.constant 0 : i32
    %c0_i32_0 = arith.constant 0 : i32
    %c0_i32_1 = arith.constant 0 : i32
    return %c0_i32, %c0_i32_0 : i32, i32
  }
  func.func @transform_3(%arg0: i32, %arg1: i32) -> (i32, i32) {
    %c0_i32 = arith.constant 0 : i32
    %c0_i32_0 = arith.constant 0 : i32
    return %arg0, %c0_i32 : i32, i32
  }
  func.func @transform_4(%arg0: i32, %arg1: i32) -> (i32, i32) {
    %c0_i32 = arith.constant 0 : i32
    %c0_i32_0 = arith.constant 0 : i32
    %c0_i32_1 = arith.constant 0 : i32
    return %c0_i32, %c0_i32_0 : i32, i32
  }
  func.func @transform_5(%arg0: i32, %arg1: i32) -> (i32, i32) {
    %c0_i32 = arith.constant 0 : i32
    %c0_i32_0 = arith.constant 0 : i32
    %c0_i32_1 = arith.constant 0 : i32
    return %c0_i32, %c0_i32_0 : i32, i32
  }
  func.func @transform_6(%arg0: i32, %arg1: i32) -> (i32, i32) {
    %c0_i32 = arith.constant 0 : i32
    %c0_i32_0 = arith.constant 0 : i32
    return %arg0, %c0_i32 : i32, i32
  }
}

module attributes {stable_mosaic.version = 11 : i64} {
  func.func @_ffn_kernel(%arg0: i32, %arg1: i32, %arg2: memref<16x32xf32, #tpu.memory_space<vmem>>, %arg3: memref<32x64xbf16, #tpu.memory_space<vmem>>, %arg4: memref<1x64xf32, #tpu.memory_space<vmem>>, %arg5: memref<64x32xbf16, #tpu.memory_space<vmem>>, %arg6: memref<1x32xf32, #tpu.memory_space<vmem>>, %arg7: memref<1x32xf32, #tpu.memory_space<vmem>>, %arg8: memref<1x32xf32, #tpu.memory_space<vmem>>, %arg9: memref<16x32xf32, #tpu.memory_space<vmem>>, %arg10: memref<16x32xf32, #tpu.memory_space<vmem>>) attributes {dimension_semantics = [#tpu.dimension_semantics<parallel>, #tpu.dimension_semantics<arbitrary>], iteration_bounds = array<i64: 1, 1>, scalar_prefetch = 0 : i64, scratch_operands = 1 : i64, tpu.core_type = #tpu.core_type<tc>, window_params = [{transform_indices = @transform_0, window_bounds = array<i64: 16, 32>}, {transform_indices = @transform_1, window_bounds = array<i64: 32, 64>}, {transform_indices = @transform_2, window_bounds = array<i64: 1, 64>}, {transform_indices = @transform_3, window_bounds = array<i64: 64, 32>}, {pipeline_mode = #tpu.pipeline_mode<synchronous>, transform_indices = @transform_4, window_bounds = array<i64: 1, 32>}, {pipeline_mode = #tpu.pipeline_mode<synchronous>, transform_indices = @transform_5, window_bounds = array<i64: 1, 32>}, {pipeline_mode = #tpu.pipeline_mode<synchronous>, transform_indices = @transform_6, window_bounds = array<i64: 1, 32>}, {transform_indices = @transform_7, window_bounds = array<i64: 16, 32>}]} {
    %c0_i32 = arith.constant 0 : i32
    %0 = arith.cmpi eq, %arg1, %c0_i32 : i32
    %1 = arith.extui %0 : i1 to i32
    %c0_i32_0 = arith.constant 0 : i32
    %2 = arith.cmpi ne, %1, %c0_i32_0 : i32
    scf.if %2 {
      %cst_30 = arith.constant 0.000000e+00 : f32
      %59 = vector.broadcast %cst_30 : f32 to vector<16x32xf32>
      %c0_31 = arith.constant 0 : index
      %c0_32 = arith.constant 0 : index
      %60 = vector.load %arg10[%c0_31, %c0_32] : memref<16x32xf32, #tpu.memory_space<vmem>>, vector<16x32xf32>
      tpu.vector_store %arg10[%c0_31, %c0_32], %59 {strides = array<i32>} : memref<16x32xf32, #tpu.memory_space<vmem>>, vector<16x32xf32>,
    } else {
    }
    %c0 = arith.constant 0 : index
    %c0_1 = arith.constant 0 : index
    %3 = vector.load %arg2[%c0, %c0_1] : memref<16x32xf32, #tpu.memory_space<vmem>>, vector<16x32xf32>
    %4 = arith.truncf %3 : vector<16x32xf32> to vector<16x32xbf16>
    %c0_2 = arith.constant 0 : index
    %c0_3 = arith.constant 0 : index
    %5 = vector.load %arg3[%c0_2, %c0_3] : memref<32x64xbf16, #tpu.memory_space<vmem>>, vector<32x64xbf16>
    %cst = arith.constant dense<0.000000e+00> : vector<16x64xf32>
    %6 = tpu.matmul %4, %5, %cst {dimension_numbers = #tpu.dot_dimension_numbers<[1], [0], [0], [1], [0, 0, 1, 1], [], []>} : vector<16x32xbf16>, vector<32x64xbf16>, vector<16x64xf32> -> vector<16x64xf32>
    %c0_4 = arith.constant 0 : index
    %c0_5 = arith.constant 0 : index
    %7 = vector.load %arg4[%c0_4, %c0_5] : memref<1x64xf32, #tpu.memory_space<vmem>>, vector<1x64xf32>
    %8 = vector.broadcast %7 : vector<1x64xf32> to vector<16x64xf32>
    %9 = arith.addf %6, %8 : vector<16x64xf32>
    %cst_6 = arith.constant 0.707106769 : f32
    %10 = vector.broadcast %cst_6 : f32 to vector<16x64xf32>
    %11 = arith.mulf %9, %10 : vector<16x64xf32>
    %12 = math.absf %11 : vector<16x64xf32>
    %cst_7 = arith.constant 0.327591091 : f32
    %13 = vector.broadcast %cst_7 : f32 to vector<16x64xf32>
    %14 = arith.mulf %13, %12 : vector<16x64xf32>
    %cst_8 = arith.constant 1.000000e+00 : f32
    %15 = vector.broadcast %cst_8 : f32 to vector<16x64xf32>
    %16 = arith.addf %15, %14 : vector<16x64xf32>
    %cst_9 = arith.constant 1.000000e+00 : f32
    %17 = vector.broadcast %cst_9 : f32 to vector<16x64xf32>
    %18 = arith.divf %17, %16 : vector<16x64xf32>
    %cst_10 = arith.constant 1.06140542 : f32
    %19 = vector.broadcast %cst_10 : f32 to vector<16x64xf32>
    %20 = arith.mulf %19, %18 : vector<16x64xf32>
    %cst_11 = arith.constant -1.45315206 : f32
    %21 = vector.broadcast %cst_11 : f32 to vector<16x64xf32>
    %22 = arith.addf %20, %21 : vector<16x64xf32>
    %23 = arith.mulf %22, %18 : vector<16x64xf32>
    %cst_12 = arith.constant 1.42141378 : f32
    %24 = vector.broadcast %cst_12 : f32 to vector<16x64xf32>
    %25 = arith.addf %23, %24 : vector<16x64xf32>
    %26 = arith.mulf %25, %18 : vector<16x64xf32>
    %cst_13 = arith.constant -0.284496725 : f32
    %27 = vector.broadcast %cst_13 : f32 to vector<16x64xf32>
    %28 = arith.addf %26, %27 : vector<16x64xf32>
    %29 = arith.mulf %28, %18 : vector<16x64xf32>
    %cst_14 = arith.constant 0.254829586 : f32
    %30 = vector.broadcast %cst_14 : f32 to vector<16x64xf32>
    %31 = arith.addf %29, %30 : vector<16x64xf32>
    %32 = arith.mulf %31, %18 : vector<16x64xf32>
    %cst_15 = arith.constant 0.000000e+00 : f32
    %33 = vector.broadcast %cst_15 : f32 to vector<16x64xf32>
    %34 = arith.subf %33, %12 : vector<16x64xf32>
    %35 = arith.mulf %34, %12 : vector<16x64xf32>
    %36 = math.exp %35 : vector<16x64xf32>
    %37 = arith.mulf %32, %36 : vector<16x64xf32>
    %cst_16 = arith.constant 1.000000e+00 : f32
    %38 = vector.broadcast %cst_16 : f32 to vector<16x64xf32>
    %39 = arith.subf %38, %37 : vector<16x64xf32>
    %cst_17 = arith.constant 0.000000e+00 : f32
    %40 = vector.broadcast %cst_17 : f32 to vector<16x64xf32>
    %41 = arith.cmpf oge, %11, %40 : vector<16x64xf32>
    %cst_18 = arith.constant 0.000000e+00 : f32
    %42 = vector.broadcast %cst_18 : f32 to vector<16x64xf32>
    %43 = arith.subf %42, %39 : vector<16x64xf32>
    %44 = arith.select %41, %39, %43 : vector<16x64xi1>, vector<16x64xf32>
    %cst_19 = arith.constant 5.000000e-01 : f32
    %45 = vector.broadcast %cst_19 : f32 to vector<16x64xf32>
    %46 = arith.mulf %45, %9 : vector<16x64xf32>
    %cst_20 = arith.constant 1.000000e+00 : f32
    %47 = vector.broadcast %cst_20 : f32 to vector<16x64xf32>
    %48 = arith.addf %47, %44 : vector<16x64xf32>
    %49 = arith.mulf %46, %48 : vector<16x64xf32>
    %c0_21 = arith.constant 0 : index
    %c0_22 = arith.constant 0 : index
    %50 = vector.load %arg10[%c0_21, %c0_22] : memref<16x32xf32, #tpu.memory_space<vmem>>, vector<16x32xf32>
    %51 = arith.truncf %49 : vector<16x64xf32> to vector<16x64xbf16>
    %c0_23 = arith.constant 0 : index
    %c0_24 = arith.constant 0 : index
    %52 = vector.load %arg5[%c0_23, %c0_24] : memref<64x32xbf16, #tpu.memory_space<vmem>>, vector<64x32xbf16>
    %cst_25 = arith.constant dense<0.000000e+00> : vector<16x32xf32>
    %53 = tpu.matmul %51, %52, %cst_25 {dimension_numbers = #tpu.dot_dimension_numbers<[1], [0], [0], [1], [0, 0, 1, 1], [], []>} : vector<16x64xbf16>, vector<64x32xbf16>, vector<16x32xf32> -> vector<16x32xf32>
    %54 = arith.addf %50, %53 : vector<16x32xf32>
    %c0_26 = arith.constant 0 : index
    %c0_27 = arith.constant 0 : index
    %55 = vector.load %arg10[%c0_26, %c0_27] : memref<16x32xf32, #tpu.memory_space<vmem>>, vector<16x32xf32>
    tpu.vector_store %arg10[%c0_26, %c0_27], %54 {strides = array<i32>} : memref<16x32xf32, #tpu.memory_space<vmem>>, vector<16x32xf32>,
    %c0_i32_28 = arith.constant 0 : i32
    %56 = arith.cmpi eq, %arg1, %c0_i32_28 : i32
    %57 = arith.extui %56 : i1 to i32
    %c0_i32_29 = arith.constant 0 : i32
    %58 = arith.cmpi ne, %57, %c0_i32_29 : i32
    scf.if %58 {
      %c0_30 = arith.constant 0 : index
      %c0_31 = arith.constant 0 : index
      %59 = vector.load %arg10[%c0_30, %c0_31] : memref<16x32xf32, #tpu.memory_space<vmem>>, vector<16x32xf32>
      %c0_32 = arith.constant 0 : index
      %c0_33 = arith.constant 0 : index
      %60 = vector.load %arg6[%c0_32, %c0_33] : memref<1x32xf32, #tpu.memory_space<vmem>>, vector<1x32xf32>
      %61 = vector.broadcast %60 : vector<1x32xf32> to vector<16x32xf32>
      %62 = arith.addf %59, %61 : vector<16x32xf32>
      %63 = arith.addf %62, %3 : vector<16x32xf32>
      %cst_34 = arith.constant dense<0.000000e+00> : vector<16xf32>
      %64 = vector.multi_reduction <add>, %63, %cst_34 [1] : vector<16x32xf32> to vector<16xf32>
      %65 = vector.shape_cast %64 : vector<16xf32> to vector<16x1xf32>
      %cst_35 = arith.constant 3.200000e+01 : f32
      %66 = vector.broadcast %cst_35 : f32 to vector<16x1xf32>
      %67 = arith.divf %65, %66 : vector<16x1xf32>
      %68 = vector.broadcast %67 : vector<16x1xf32> to vector<16x32xf32>
      %69 = arith.subf %63, %68 : vector<16x32xf32>
      %70 = arith.mulf %69, %69 : vector<16x32xf32>
      %cst_36 = arith.constant dense<0.000000e+00> : vector<16xf32>
      %71 = vector.multi_reduction <add>, %70, %cst_36 [1] : vector<16x32xf32> to vector<16xf32>
      %72 = vector.shape_cast %71 : vector<16xf32> to vector<16x1xf32>
      %cst_37 = arith.constant 3.200000e+01 : f32
      %73 = vector.broadcast %cst_37 : f32 to vector<16x1xf32>
      %74 = arith.divf %72, %73 : vector<16x1xf32>
      %75 = vector.broadcast %67 : vector<16x1xf32> to vector<16x32xf32>
      %76 = arith.subf %63, %75 : vector<16x32xf32>
      %cst_38 = arith.constant 9.99999996E-13 : f32
      %77 = vector.broadcast %cst_38 : f32 to vector<16x1xf32>
      %78 = arith.addf %74, %77 : vector<16x1xf32>
      %79 = math.rsqrt %78 : vector<16x1xf32>
      %80 = vector.broadcast %79 : vector<16x1xf32> to vector<16x32xf32>
      %81 = arith.mulf %76, %80 : vector<16x32xf32>
      %c0_39 = arith.constant 0 : index
      %c0_40 = arith.constant 0 : index
      %82 = vector.load %arg7[%c0_39, %c0_40] : memref<1x32xf32, #tpu.memory_space<vmem>>, vector<1x32xf32>
      %83 = vector.broadcast %82 : vector<1x32xf32> to vector<16x32xf32>
      %84 = arith.mulf %81, %83 : vector<16x32xf32>
      %c0_41 = arith.constant 0 : index
      %c0_42 = arith.constant 0 : index
      %85 = vector.load %arg8[%c0_41, %c0_42] : memref<1x32xf32, #tpu.memory_space<vmem>>, vector<1x32xf32>
      %86 = vector.broadcast %85 : vector<1x32xf32> to vector<16x32xf32>
      %87 = arith.addf %84, %86 : vector<16x32xf32>
      %c0_43 = arith.constant 0 : index
      %c0_44 = arith.constant 0 : index
      %88 = vector.load %arg9[%c0_43, %c0_44] : memref<16x32xf32, #tpu.memory_space<vmem>>, vector<16x32xf32>
      tpu.vector_store %arg9[%c0_43, %c0_44], %87 {strides = array<i32>} : memref<16x32xf32, #tpu.memory_space<vmem>>, vector<16x32xf32>,
    } else {
    }
    return
  }
  func.func @transform_0(%arg0: i32, %arg1: i32) -> (i32, i32) {
    %c0_i32 = arith.constant 0 : i32
    %c0_i32_0 = arith.constant 0 : i32
    return %arg0, %c0_i32 : i32, i32
  }
  func.func @transform_1(%arg0: i32, %arg1: i32) -> (i32, i32) {
    %c0_i32 = arith.constant 0 : i32
    %c0_i32_0 = arith.constant 0 : i32
    return %c0_i32, %arg1 : i32, i32
  }
  func.func @transform_2(%arg0: i32, %arg1: i32) -> (i32, i32) {
    %c0_i32 = arith.constant 0 : i32
    %c0_i32_0 = arith.constant 0 : i32
    return %c0_i32, %arg1 : i32, i32
  }
  func.func @transform_3(%arg0: i32, %arg1: i32) -> (i32, i32) {
    %c0_i32 = arith.constant 0 : i32
    %c0_i32_0 = arith.constant 0 : i32
    return %arg1, %c0_i32 : i32, i32
  }
  func.func @transform_4(%arg0: i32, %arg1: i32) -> (i32, i32) {
    %c0_i32 = arith.constant 0 : i32
    %c0_i32_0 = arith.constant 0 : i32
    %c0_i32_1 = arith.constant 0 : i32
    return %c0_i32, %c0_i32_0 : i32, i32
  }
  func.func @transform_5(%arg0: i32, %arg1: i32) -> (i32, i32) {
    %c0_i32 = arith.constant 0 : i32
    %c0_i32_0 = arith.constant 0 : i32
    %c0_i32_1 = arith.constant 0 : i32
    return %c0_i32, %c0_i32_0 : i32, i32
  }
  func.func @transform_6(%arg0: i32, %arg1: i32) -> (i32, i32) {
    %c0_i32 = arith.constant 0 : i32
    %c0_i32_0 = arith.constant 0 : i32
    %c0_i32_1 = arith.constant 0 : i32
    return %c0_i32, %c0_i32_0 : i32, i32
  }
  func.func @transform_7(%arg0: i32, %arg1: i32) -> (i32, i32) {
    %c0_i32 = arith.constant 0 : i32
    %c0_i32_0 = arith.constant 0 : i32
    return %arg0, %c0_i32 : i32, i32
  }
}

module attributes {stable_mosaic.version = 11 : i64} {
  func.func @_linear_bias_kernel(%arg0: i32, %arg1: i32, %arg2: i32, %arg3: memref<2x128xf32, #tpu.memory_space<vmem>>, %arg4: memref<128x128xf32, #tpu.memory_space<vmem>>, %arg5: memref<1x128xf32, #tpu.memory_space<vmem>>, %arg6: memref<2x128xf32, #tpu.memory_space<vmem>>, %arg7: memref<2x128xf32, #tpu.memory_space<vmem>>) attributes {dimension_semantics = [#tpu.dimension_semantics<parallel>, #tpu.dimension_semantics<parallel>, #tpu.dimension_semantics<arbitrary>], iteration_bounds = array<i64: 1, 1, 1>, scalar_prefetch = 0 : i64, scratch_operands = 1 : i64, tpu.core_type = #tpu.core_type<tc>, window_params = [{transform_indices = @transform_0, window_bounds = array<i64: 2, 128>}, {transform_indices = @transform_1, window_bounds = array<i64: 128, 128>}, {transform_indices = @transform_2, window_bounds = array<i64: 1, 128>}, {transform_indices = @transform_3, window_bounds = array<i64: 2, 128>}]} {
    %c0_i32 = arith.constant 0 : i32
    %0 = arith.cmpi eq, %arg2, %c0_i32 : i32
    %1 = arith.extui %0 : i1 to i32
    %c0_i32_0 = arith.constant 0 : i32
    %2 = arith.cmpi ne, %1, %c0_i32_0 : i32
    scf.if %2 {
      %cst_10 = arith.constant 0.000000e+00 : f32
      %12 = vector.broadcast %cst_10 : f32 to vector<2x128xf32>
      %c0_11 = arith.constant 0 : index
      %c0_12 = arith.constant 0 : index
      %13 = vector.load %arg7[%c0_11, %c0_12] : memref<2x128xf32, #tpu.memory_space<vmem>>, vector<2x128xf32>
      tpu.vector_store %arg7[%c0_11, %c0_12], %12 {strides = array<i32>} : memref<2x128xf32, #tpu.memory_space<vmem>>, vector<2x128xf32>,
    } else {
    }
    %c0 = arith.constant 0 : index
    %c0_1 = arith.constant 0 : index
    %3 = vector.load %arg7[%c0, %c0_1] : memref<2x128xf32, #tpu.memory_space<vmem>>, vector<2x128xf32>
    %c0_2 = arith.constant 0 : index
    %c0_3 = arith.constant 0 : index
    %4 = vector.load %arg3[%c0_2, %c0_3] : memref<2x128xf32, #tpu.memory_space<vmem>>, vector<2x128xf32>
    %c0_4 = arith.constant 0 : index
    %c0_5 = arith.constant 0 : index
    %5 = vector.load %arg4[%c0_4, %c0_5] : memref<128x128xf32, #tpu.memory_space<vmem>>, vector<128x128xf32>
    %cst = arith.constant dense<0.000000e+00> : vector<2x128xf32>
    %6 = tpu.matmul %4, %5, %cst {dimension_numbers = #tpu.dot_dimension_numbers<[1], [0], [0], [1], [0, 0, 1, 1], [], []>} : vector<2x128xf32>, vector<128x128xf32>, vector<2x128xf32> -> vector<2x128xf32>
    %7 = arith.addf %3, %6 : vector<2x128xf32>
    %c0_6 = arith.constant 0 : index
    %c0_7 = arith.constant 0 : index
    %8 = vector.load %arg7[%c0_6, %c0_7] : memref<2x128xf32, #tpu.memory_space<vmem>>, vector<2x128xf32>
    tpu.vector_store %arg7[%c0_6, %c0_7], %7 {strides = array<i32>} : memref<2x128xf32, #tpu.memory_space<vmem>>, vector<2x128xf32>,
    %c0_i32_8 = arith.constant 0 : i32
    %9 = arith.cmpi eq, %arg2, %c0_i32_8 : i32
    %10 = arith.extui %9 : i1 to i32
    %c0_i32_9 = arith.constant 0 : i32
    %11 = arith.cmpi ne, %10, %c0_i32_9 : i32
    scf.if %11 {
      %c0_10 = arith.constant 0 : index
      %c0_11 = arith.constant 0 : index
      %12 = vector.load %arg7[%c0_10, %c0_11] : memref<2x128xf32, #tpu.memory_space<vmem>>, vector<2x128xf32>
      %c0_12 = arith.constant 0 : index
      %c0_13 = arith.constant 0 : index
      %13 = vector.load %arg5[%c0_12, %c0_13] : memref<1x128xf32, #tpu.memory_space<vmem>>, vector<1x128xf32>
      %14 = vector.broadcast %13 : vector<1x128xf32> to vector<2x128xf32>
      %15 = arith.addf %12, %14 : vector<2x128xf32>
      %c0_14 = arith.constant 0 : index
      %c0_15 = arith.constant 0 : index
      %16 = vector.load %arg6[%c0_14, %c0_15] : memref<2x128xf32, #tpu.memory_space<vmem>>, vector<2x128xf32>
      tpu.vector_store %arg6[%c0_14, %c0_15], %15 {strides = array<i32>} : memref<2x128xf32, #tpu.memory_space<vmem>>, vector<2x128xf32>,
    } else {
    }
    return
  }
  func.func @transform_0(%arg0: i32, %arg1: i32, %arg2: i32) -> (i32, i32) {
    %c0_i32 = arith.constant 0 : i32
    return %arg0, %arg2 : i32, i32
  }
  func.func @transform_1(%arg0: i32, %arg1: i32, %arg2: i32) -> (i32, i32) {
    %c0_i32 = arith.constant 0 : i32
    return %arg2, %arg1 : i32, i32
  }
  func.func @transform_2(%arg0: i32, %arg1: i32, %arg2: i32) -> (i32, i32) {
    %c0_i32 = arith.constant 0 : i32
    %c0_i32_0 = arith.constant 0 : i32
    return %c0_i32, %arg1 : i32, i32
  }
  func.func @transform_3(%arg0: i32, %arg1: i32, %arg2: i32) -> (i32, i32) {
    %c0_i32 = arith.constant 0 : i32
    return %arg0, %arg1 : i32, i32
  }
}

</mosaic_0001>

<bundles_post_ra>
// kernel: lim_bert_layer_forward.6
= control target key start
LH: loop header
LB: loop body
LE: loop exit
PB: predicated region body
PF: predicated region fallthrough
CT: control target
= control target key end

     0   :  { %vm19_vm0 = vcmask 785408   ;;  %v145_v0 = vmov 0.0   ;;  %vm146_vm1 = vmmov 0   ;;  %vm43_vm2 = vcmask 261120   ;;  %s192_s1 = inlined_call_operand.vmem [shape: bf16[32,96], index: 1, kind: input, shape index: {}]   ;;  %s193_s0 = inlined_call_operand.vmem [shape: f32[16,32], index: 0, kind: input, shape index: {}]   ;;  %s194_s2 = inlined_call_operand.vmem [shape: f32[1,96], index: 2, kind: input, shape index: {}]   ;;  %s195_s3 = inlined_call_operand.vmem [shape: bf16[16,96], index: 3, kind: output, shape index: {}]  }
   0x1   :  { %133 = vmatprep.subr.bf16.mxu0 %v145_v0  ;;  %v143_v1 = vld [vmem:[%s192_s1] sm:$0xff]   ;;  %137 = vmatprep.mubr.msk.bf16.mxu0 %vm146_vm1, %v145_v0  ;;  %20 = vst.msk [vmem:[#allocation2] sm:$0xff] %vm19_vm0, %v145_v0  ;;  %21 = vst.msk [vmem:[#allocation2 + $0x8] sm:$0xff] %vm19_vm0, %v145_v0  ;;  %v144_v2 = vld [vmem:[%s192_s1 + $0x8] sm:$0xff]   ;;  %vm115_vm3 = vcmask 781312  }
   0x2   :  { %134 = vmatpush3.bf16.msra.mxu0 %v143_v1  ;;  %v24_v3 = vld [vmem:[%s193_s0] sm:$0xff]  ;;  %v25_v4 = vld [vmem:[%s193_s0 + $0x8] sm:$0xff] }
   0x3   :  { %135 = vmatprep.subr.bf16.mxu0 %v145_v0  ;;  %v26_v5 = vpack.c.bf16 %v25_v4, %v24_v3  ;;  %v125_v14 = vld [vmem:[%s194_s2] ss:$0 sm:$0xff] }
   0x6   :  { %136 = vmatpush3.bf16.msra.mxu0 %v144_v2 }
   0x8   :  { %v22_v6 = vld [vmem:[#allocation2] sm:$0xff]  ;;  %v23_v8 = vld [vmem:[#allocation2 + $0x8] sm:$0xff] }
   0x9   :  { %138 = vmatmul.mubr.msk.bf16.vlgmr.msra.gmra.mrb[0].mxu0 %vm43_vm2, %v26_v5 }
  0xdc   :  { %v81_v7 = vpop.f32.mrb[0].mxu0 }
  0xdd   :  { %v88_v9 = vadd.f32 %v81_v7, %v22_v6  ;;  %v139_v10 = vpop.f32.mrb[1].mxu0 }
  0xde   :  { %v84_v11 = vpop.f32.mrb[2].mxu0 }
  0xdf   :  { %91 = vst.msk [vmem:[#allocation2] sm:$0xff] %vm19_vm0, %v88_v9  ;;  %v89_v12 = vadd.f32 %v84_v11, %v23_v8  ;;  %v140_v13 = vpop.f32.mrb[3].mxu0 }
  0xe1   :  { %92 = vst.msk [vmem:[#allocation2 + $0x8] sm:$0xff] %vm19_vm0, %v89_v12 }
  0xe6   :  { %v96_v15 = vld [vmem:[#allocation2] sm:$0xff] }
  0xe7   :  { %v105_v16 = vadd.f32 %v125_v14, %v96_v15 }
  0xe8   :  { %v97_v17 = vld [vmem:[#allocation2 + $0x8] sm:$0xff] }
  0xe9   :  { %v128_v18 = vpack.c.bf16 %v105_v16, %v105_v16  ;;  %v106_v19 = vadd.f32 %v125_v14, %v97_v17 }
  0xeb   :  { %116 = vst.msk [vmem:[%s195_s3] sm:$0xf] %vm115_vm3, %v128_v18  ;;  %v129_v20 = vpack.c.bf16 %v106_v19, %v106_v19 }
  0xed   :  { %117 = vst.msk [vmem:[%s195_s3 + $0x4] sm:$0xf] %vm115_vm3, %v129_v20 }

// kernel: lim_bert_layer_forward.7
= control target key start
LH: loop header
LB: loop body
LE: loop exit
PB: predicated region body
PF: predicated region fallthrough
CT: control target
= control target key end

     0   :  { %s641_s12 = smov 0   ;;  %s643_s13 = smov 0   ;;  %s707_s0 = inlined_call_operand.vmem [shape: bf16[2,2,8,16], index: 0, kind: input, shape index: {}]   ;;  %s708_s1 = inlined_call_operand.vmem [shape: bf16[2,2,8,16], index: 1, kind: input, shape index: {}]   ;;  %s709_s2 = inlined_call_operand.vmem [shape: bf16[2,2,8,16], index: 2, kind: input, shape index: {}]   ;;  %s710_s3 = inlined_call_operand.vmem [shape: bf16[2,2,8,16], index: 3, kind: output, shape index: {}]  }
   0x1   :  { %s645_s14 = smov 0   ;;  %s647_s15 = smov 0  }
   0x2   :  { %s649_s16 = smov 0  }
   0x3 LB: > { %s22_s17 = sadd.s32 1, %s609_s14  ;;  %s25_s18 = sadd.s32 1, %s613_s15  ;;  %s617_s16 = sphi %s649_s16, %s13_s16   ;;  %s613_s15 = sphi %s647_s15, %s714_s15   ;;  %s609_s14 = sphi %s645_s14, %s713_s14   ;;  %s605_s13 = sphi %s643_s13, %s712_s13   ;;  %s601_s12 = sphi %s641_s12, %s711_s12  }
   0x4   : > { %p23_p0 = scmp.ge.s32.totalorder %s22_s17, 2  ;;  %p504_p1 = scmp.ge.s32.totalorder %s617_s16, 1 }
   0x5   : > { %p186_p2 = scmp.lt.s32.totalorder %s617_s16, 5 }
   0x6   : > { %s716_s17 = smov (%p23_p0, %s22_s17), 0  ;;  %s718_s18 = smov (!%p23_p0, %s25_s18), %s613_s15 }
   0x7   : > { %p187_p3 = pnand %p504_p1, %p186_p2  ;;  %p27_p4 = scmp.ge.s32.totalorder %s718_s18, 2 }
   0x8   : > { %p232_p5 = scmp.lt.s32.totalorder (!%p187_p3), %s605_s13, 1  ;;  %p234_p6 = scmp.lt.s32.totalorder (!%p187_p3), %s601_s12, 1  ;;  %v619_v0 = vmov (!%p187_p3), 0.0   ;;  %vm620_vm0 = vmmov (!%p187_p3), 0   ;;  %vm268_vm1 = vcmask (!%p187_p3), 130048   ;;  %vm315_vm2 = vcmask (!%p187_p3), 64512  }
   0x9   : > { %s720_s18 = smov (%p27_p4, %s718_s18), 0  ;;  %190 = sbr.rel (%p187_p3) target bundleno = 773 (0x305), region = 32 }
   0xa   : > { %521 = vmatprep.subr.bf16.mxu0 (!%p187_p3), %v619_v0  ;;  %523 = vmatprep.mubr.msk.bf16.mxu0 (!%p187_p3), %vm620_vm0, %v619_v0  ;;  %vm331_vm3 = vcmask (!%p187_p3), 1043456   ;;  %vm376_vm4 = vcmask (!%p187_p3), 125952  }
   0xb   : > { %527 = vmatprep.subr.bf16.mxu1 (!%p187_p3), %v619_v0  ;;  %529 = vmatprep.mubr.msk.bf16.mxu1 (!%p187_p3), %vm620_vm0, %v619_v0 }
  0x10   : > { %s722_s13 = smov (!%p232_p5, %s605_s13), 1  ;;  %s724_s12 = smov (!%p234_p6, %s601_s12), 1 }
  0x11   : > { %s505_s19 = sshll.u32 %s722_s13, 1 }
  0x12   : > { %s237_s20 = sadd.s32 %s505_s19, %s724_s12 }
  0x13   : > { %s671_s21 = sshll.u32 %s237_s20, 2 }
  0x14   : > { %s247_s24 = scalar_lea.vmem %s708_s1, %s671_s21  ;;  %s239_s27 = scalar_lea.vmem %s707_s0, %s671_s21 }
  0x15   : > { %v266_v1 = vld [vmem:[%s247_s24] sm:$0xf]  ;;  %s255_s30 = scalar_lea.vmem %s709_s2, %s671_s21  ;;  %s263_s6 = scalar_lea.vmem %s710_s3, %s671_s21 }
  0x16   : > { %v273_v2 = vsel %vm268_vm1, %v266_v1, 0  ;;  %v265_v3 = vld [vmem:[%s239_s27] sm:$0xf] }
  0x17   : > { %522 = vmatpush3.bf16.xpose.msra.mxu0 %v273_v2  ;;  %v267_v14 = vld [vmem:[%s255_s30] sm:$0xf] }
  0x18   : > { %v333_v15 = vsel %vm331_vm3, %v267_v14, 0 }
  0x19   : > { %528 = vmatpush3.bf16.msra.mxu1 %v333_v15 }
  0x1e   : > { %524 = vmatmul.mubr.msk.bf16.vlgmr.msra.gmra.mrb[0].mxu0 %vm268_vm1, %v265_v3 }
  0xf1   : > { %v309_v4 = vpop.f32.mrb[0].mxu0 }
  0xf2   : > { %v525_v5 = vpop.f32.mrb[1].mxu0  ;;  %v316_v6 = vsel %vm315_vm2, %v309_v4, -inf }
  0xf3   : > { %317 = vmax.xlane.f32.xlu0 %v316_v6  ;;  %v312_v7 = vpop.f32.mrb[2].mxu0 }
  0xf4   : > { %v526_v8 = vpop.f32.mrb[3].mxu0 }
 0x180   : > { %v318_v9 = vpop.xlane.xlu0 %317 }
 0x181   : > { %v319_v10 = vsub.f32 %v309_v4, %v318_v9 }
 0x183   : > { %v320_v11 = vmul.f32 1.442695, %v319_v10 }
 0x185   : > { %575 = vpow2.f32 %v320_v11 }
 0x18f   : > { %v576_v12 = vpop.eup %575 }
 0x190   : > { %v322_v13 = vsel %vm315_vm2, %v576_v12, 0.0 }
 0x191   : > { %323 = vadd.xlane.f32.xlu0 %v322_v13 }
 0x21e   : > { %v324_v16 = vpop.xlane.xlu0 %323 }
 0x21f   : > { %577 = vrcp.f32 %v324_v16 }
 0x229   : > { %v578_v17 = vpop.eup %577 }
 0x22a   : > { %v326_v18 = vmul.f32 %v578_v17, %v576_v12 }
 0x22c   : > { %v327_v19 = vpack.c.bf16 %v326_v18, %v326_v18 }
 0x22e   : > { %530 = vmatmul.mubr.msk.bf16.vlgmr.msra.gmra.mrb[0].mxu1 %vm315_vm2, %v327_v19 }
 0x301   : > { %v369_v20 = vpop.f32.mrb[0].mxu1 }
 0x302   : > { %v375_v21 = vpack.c.bf16 %v369_v20, %v369_v20  ;;  %v531_v22 = vpop.f32.mrb[1].mxu1 }
 0x303   : > { %v372_v23 = vpop.f32.mrb[2].mxu1 }
 0x304   : > { %377 = vst.msk [vmem:[%s263_s6] sm:$0xf] %vm376_vm4, %v375_v21  ;;  %v532_v24 = vpop.f32.mrb[3].mxu1 }
 0x305 PF: > { %s13_s16 = sadd.s32 1, %s617_s16   ;;  %s711_s12 = smov %s609_s14 }
 0x306   : > { %p10_p7 = scmp.ge.s32.totalorder %s13_s16, 6   ;;  %s712_s13 = smov %s613_s15 }
 0x307   : > { %s713_s14 = smov %s716_s17  ;;  %s714_s15 = smov %s720_s18 }
 0x308   :  { %12 = sbr.rel (!%p10_p7) target bundleno = 3 (0x3), region = 68 }

// kernel: lim_bert_layer_forward.8
= control target key start
LH: loop header
LB: loop body
LE: loop exit
PB: predicated region body
PF: predicated region fallthrough
CT: control target
= control target key end

     0   :  { %vm28_vm0 = vcmask 261120   ;;  %v201_v0 = vmov 0.0   ;;  %vm202_vm1 = vmmov 0   ;;  %s279_s1 = inlined_call_operand.vmem [shape: bf16[32,32], index: 1, kind: input, shape index: {}]   ;;  %s280_s0 = inlined_call_operand.vmem [shape: bf16[16,32], index: 0, kind: input, shape index: {}]   ;;  %s281_s2 = inlined_call_operand.vmem [shape: f32[1,32], index: 2, kind: input, shape index: {}]   ;;  %s282_s3 = inlined_call_operand.vmem [shape: f32[16,32], index: 3, kind: input, shape index: {}]   ;;  %s283_s4 = inlined_call_operand.vmem [shape: f32[1,32], index: 4, kind: input, shape index: {}]   ;;  %s284_s5 = inlined_call_operand.vmem [shape: f32[1,32], index: 5, kind: input, shape index: {}]   ;;  %s285_s6 = inlined_call_operand.vmem [shape: f32[16,32], index: 6, kind: output, shape index: {}]  }
   0x1   :  { %184 = vmatprep.subr.bf16.mxu0 %v201_v0  ;;  %v194_v1 = vld [vmem:[%s279_s1] sm:$0xff]   ;;  %188 = vmatprep.mubr.msk.bf16.mxu0 %vm202_vm1, %v201_v0  ;;  %29 = vst.msk [vmem:[#allocation2] sm:$0xff] %vm28_vm0, %v201_v0  ;;  %30 = vst.msk [vmem:[#allocation2 + $0x8] sm:$0xff] %vm28_vm0, %v201_v0  ;;  %v195_v2 = vld [vmem:[%s279_s1 + $0x8] sm:$0xff]  }
   0x2   :  { %185 = vmatpush3.bf16.msra.mxu0 %v194_v1  ;;  %v196_v3 = vld [vmem:[%s280_s0] sm:$0xff]   ;;  %v120_v17 = vld [vmem:[%s282_s3 + $0x8] sm:$0xff] }
   0x3   :  { %186 = vmatprep.subr.bf16.mxu0 %v201_v0  ;;  %v178_v12 = vld [vmem:[%s281_s2] ss:$0 sm:$0xff] }
   0x4   :  { %v119_v14 = vld [vmem:[%s282_s3] sm:$0xff] }
   0x5   :  { %v179_v40 = vld [vmem:[%s283_s4] ss:$0 sm:$0xff] }
   0x6   :  { %187 = vmatpush3.bf16.msra.mxu0 %v195_v2  ;;  %v180_v42 = vld [vmem:[%s284_s5] ss:$0 sm:$0xff] }
   0x8   :  { %v31_v4 = vld [vmem:[#allocation2] sm:$0xff]  ;;  %v32_v6 = vld [vmem:[#allocation2 + $0x8] sm:$0xff] }
   0x9   :  { %189 = vmatmul.mubr.msk.bf16.vlgmr.msra.gmra.mrb[0].mxu0 %vm28_vm0, %v196_v3 }
  0xdc   :  { %v94_v5 = vpop.f32.mrb[0].mxu0 }
  0xdd   :  { %v101_v7 = vadd.f32 %v94_v5, %v31_v4  ;;  %v190_v8 = vpop.f32.mrb[1].mxu0 }
  0xde   :  { %v97_v9 = vpop.f32.mrb[2].mxu0 }
  0xdf   :  { %103 = vst.msk [vmem:[#allocation2] sm:$0xff] %vm28_vm0, %v101_v7  ;;  %v102_v10 = vadd.f32 %v97_v9, %v32_v6  ;;  %v191_v11 = vpop.f32.mrb[3].mxu0 }
  0xe1   :  { %104 = vst.msk [vmem:[#allocation2 + $0x8] sm:$0xff] %vm28_vm0, %v102_v10 }
  0xe6   :  { %v108_v13 = vld [vmem:[#allocation2] sm:$0xff] }
  0xe7   :  { %v117_v15 = vadd.f32 %v178_v12, %v108_v13 }
  0xe8   :  { %v109_v16 = vld [vmem:[#allocation2 + $0x8] sm:$0xff] }
  0xe9   :  { %v121_v18 = vadd.f32 %v119_v14, %v117_v15  ;;  %v118_v19 = vadd.f32 %v178_v12, %v109_v16 }
  0xeb   :  { %v123_v20 = vsel %vm28_vm0, %v121_v18, 0.0  ;;  %v122_v21 = vadd.f32 %v120_v17, %v118_v19 }
  0xec   :  { %124 = vadd.xlane.f32.xlu0 %v123_v20 }
  0xed   :  { %v126_v22 = vsel %vm28_vm0, %v122_v21, 0.0 }
  0xf0   :  { %127 = vadd.xlane.f32.xlu0 %v126_v22 }
 0x179   :  { %v125_v23 = vpop.xlane.xlu0 %124 }
 0x17a   :  { %v130_v24 = vmul.f32 0.03125, %v125_v23 }
 0x17c   :  { %v132_v25 = vsub.f32 %v121_v18, %v130_v24 }
 0x17d   :  { %v128_v26 = vpop.xlane.xlu0 %127 }
 0x17e   :  { %v131_v27 = vmul.f32 0.03125, %v128_v26  ;;  %v134_v28 = vmul.f32 %v132_v25, %v132_v25 }
 0x180   :  { %v133_v29 = vsub.f32 %v122_v21, %v131_v27  ;;  %v136_v30 = vsel %vm28_vm0, %v134_v28, 0.0 }
 0x181   :  { %137 = vadd.xlane.f32.xlu1 %v136_v30 }
 0x182   :  { %v135_v31 = vmul.f32 %v133_v29, %v133_v29 }
 0x184   :  { %v139_v32 = vsel %vm28_vm0, %v135_v31, 0.0 }
 0x185   :  { %140 = vadd.xlane.f32.xlu1 %v139_v32 }
 0x20e   :  { %v138_v33 = vpop.xlane.xlu1 %137 }
 0x20f   :  { %v142_v34 = vmul.f32 0.03125, %v138_v33 }
 0x211   :  { %v144_v35 = vadd.f32 1e-12, %v142_v34 }
 0x212   :  { %v141_v36 = vpop.xlane.xlu1 %140 }
 0x213   :  { %197 = vrsqrt.f32 %v144_v35  ;;  %v143_v37 = vmul.f32 0.03125, %v141_v36 }
 0x215   :  { %v145_v38 = vadd.f32 1e-12, %v143_v37 }
 0x217   :  { %199 = vrsqrt.f32 %v145_v38 }
 0x21d   :  { %v198_v39 = vpop.eup %197 }
 0x21e   :  { %v148_v41 = vmul.f32 %v198_v39, %v132_v25 }
 0x220   :  { %v157_v43 = vmul.f32 %v179_v40, %v148_v41 }
 0x221   :  { %v200_v44 = vpop.eup %199 }
 0x222   :  { %v166_v45 = vadd.f32 %v180_v42, %v157_v43  ;;  %v149_v46 = vmul.f32 %v200_v44, %v133_v29 }
 0x224   :  { %168 = vst.msk [vmem:[%s285_s6] sm:$0xff] %vm28_vm0, %v166_v45  ;;  %v158_v47 = vmul.f32 %v179_v40, %v149_v46 }
 0x226   :  { %v167_v48 = vadd.f32 %v180_v42, %v158_v47 }
 0x228   :  { %169 = vst.msk [vmem:[%s285_s6 + $0x8] sm:$0xff] %vm28_vm0, %v167_v48 }

// kernel: lim_bert_layer_forward.9
= control target key start
LH: loop header
LB: loop body
LE: loop exit
PB: predicated region body
PF: predicated region fallthrough
CT: control target
= control target key end

     0   :  { %vm31_vm0 = vcmask 261120   ;;  %v370_v0 = vmov 0.0   ;;  %vm371_vm1 = vmmov 0   ;;  %vm194_vm4 = vcmask 523264   ;;  %s473_s1 = inlined_call_operand.vmem [shape: bf16[32,64], index: 1, kind: input, shape index: {}]   ;;  %s474_s0 = inlined_call_operand.vmem [shape: f32[16,32], index: 0, kind: input, shape index: {}]   ;;  %s475_s3 = inlined_call_operand.vmem [shape: bf16[64,32], index: 3, kind: input, shape index: {}]   ;;  %s476_s2 = inlined_call_operand.vmem [shape: f32[1,64], index: 2, kind: input, shape index: {}]   ;;  %s477_s4 = inlined_call_operand.vmem [shape: f32[1,32], index: 4, kind: input, shape index: {}]   ;;  %s478_s5 = inlined_call_operand.vmem [shape: f32[1,32], index: 5, kind: input, shape index: {}]   ;;  %s479_s6 = inlined_call_operand.vmem [shape: f32[1,32], index: 6, kind: input, shape index: {}]   ;;  %s480_s7 = inlined_call_operand.vmem [shape: f32[16,32], index: 7, kind: output, shape index: {}]  }
   0x1   :  { %330 = vmatprep.subr.bf16.mxu0 %v370_v0  ;;  %v352_v1 = vld [vmem:[%s473_s1] sm:$0xff]   ;;  %334 = vmatprep.mubr.msk.bf16.mxu0 %vm371_vm1, %v370_v0  ;;  %32 = vst.msk [vmem:[#allocation2] sm:$0xff] %vm31_vm0, %v370_v0  ;;  %33 = vst.msk [vmem:[#allocation2 + $0x8] sm:$0xff] %vm31_vm0, %v370_v0  ;;  %v353_v2 = vld [vmem:[%s473_s1 + $0x8] sm:$0xff]  }
   0x2   :  { %338 = vmatprep.subr.bf16.mxu1 %v370_v0  ;;  %346 = vmatprep.mubr.msk.bf16.mxu1 %vm371_vm1, %v370_v0  ;;  %v423_v3 = vld [vmem:[%s474_s0] sm:$0xff]  ;;  %v428_v4 = vld [vmem:[%s474_s0 + $0x8] sm:$0xff]  ;;  %v356_v8 = vld [vmem:[%s475_s3 + $0x10] sm:$0xff]  }
   0x3   :  { %331 = vmatpush3.bf16.msra.mxu0 %v352_v1  ;;  %v36_v5 = vpack.c.bf16 %v428_v4, %v423_v3  ;;  %v354_v6 = vld [vmem:[%s475_s3] sm:$0xff]   ;;  %v355_v7 = vld [vmem:[%s475_s3 + $0x8] sm:$0xff]   ;;  %v357_v9 = vld [vmem:[%s475_s3 + $0x18] sm:$0xff]  }
   0x4   :  { %332 = vmatprep.subr.bf16.mxu0 %v370_v0  ;;  %339 = vmatpush3.bf16.msra.mxu1 %v354_v6  ;;  %v310_v10 = vld [vmem:[%s476_s2] ss:$0 sm:$0xff] }
   0x5   :  { %340 = vmatprep.subr.bf16.mxu1 %v370_v0 }
   0x7   :  { %333 = vmatpush3.bf16.msra.mxu0 %v353_v2 }
   0x8   :  { %341 = vmatpush3.bf16.msra.mxu1 %v355_v7  ;;  %v159_v6 = vld [vmem:[#allocation2] sm:$0xff] }
   0x9   :  { %342 = vmatprep.subr.bf16.mxu1 %v370_v0 }
   0xa   :  { %335 = vmatmul.mubr.msk.bf16.vlgmr.msra.gmra.mrb[0].mxu0 %vm31_vm0, %v36_v5 }
   0xc   :  { %343 = vmatpush3.bf16.msra.mxu1 %v356_v8  ;;  %v160_v8 = vld [vmem:[#allocation2 + $0x8] sm:$0xff] }
   0xd   :  { %344 = vmatprep.subr.bf16.mxu1 %v370_v0 }
  0x10   :  { %345 = vmatpush3.bf16.msra.mxu1 %v357_v9 }
  0xdd   :  { %v98_v11 = vpop.f32.mrb[0].mxu0 }
  0xde   :  { %v99_v12 = vadd.f32 %v310_v10, %v98_v11  ;;  %v336_v13 = vpop.f32.mrb[1].mxu0 }
  0xdf   :  { %v101_v14 = vpop.f32.mrb[2].mxu0 }
  0xe0   :  { %v105_v15 = vmul.f32 0.70710677, %v99_v12  ;;  %v102_v16 = vadd.f32 %v310_v10, %v101_v14  ;;  %v337_v17 = vpop.f32.mrb[3].mxu0  ;;  %v153_v62 = vmul.f32 0.5, %v99_v12  ;;  %v319_v12 = vld [vmem:[%s477_s4] ss:$0 sm:$0xff] }
  0xe2   :  { %v107_v18 = vand.u32 2147483647, %v105_v15  ;;  %v106_v19 = vmul.f32 0.70710677, %v102_v16  ;;  %vm147_vm2 = vcmp.ge.f32.partialorder %v105_v15, 0.0  ;;  %v154_v63 = vmul.f32 0.5, %v102_v16 }
  0xe4   :  { %v109_v20 = vmul.f32 0.3275911, %v107_v18  ;;  %v108_v21 = vand.u32 2147483647, %v106_v19  ;;  %v135_v25 = vsub.f32 0.0, %v107_v18  ;;  %vm148_vm3 = vcmp.ge.f32.partialorder %v106_v19, 0.0 }
  0xe6   :  { %v111_v22 = vadd.f32 1.0, %v109_v20  ;;  %v110_v23 = vmul.f32 0.3275911, %v108_v21  ;;  %v136_v26 = vsub.f32 0.0, %v108_v21  ;;  %v137_v28 = vmul.f32 %v135_v25, %v107_v18 }
  0xe8   :  { %358 = vrcp.f32 %v111_v22  ;;  %v112_v24 = vadd.f32 1.0, %v110_v23  ;;  %v138_v32 = vmul.f32 %v136_v26, %v108_v21  ;;  %v139_v33 = vmul.f32 1.442695, %v137_v28 }
  0xea   :  { %360 = vrcp.f32 %v112_v24  ;;  %v141_v38 = vmul.f32 1.442695, %v138_v32 }
  0xeb   :  { %362 = vpow2.f32 %v139_v33 }
  0xec   :  { %364 = vpow2.f32 %v141_v38  ;;  %v320_v38 = vld [vmem:[%s478_s5] ss:$0 sm:$0xff] }
  0xf2   :  { %v359_v27 = vpop.eup %358 }
  0xf3   :  { %v117_v29 = vmul.f32 1.0614054, %v359_v27 }
  0xf4   :  { %v361_v30 = vpop.eup %360 }
  0xf5   :  { %v119_v31 = vadd.f32 -1.4531521, %v117_v29  ;;  %v118_v34 = vmul.f32 1.0614054, %v361_v30  ;;  %v363_v49 = vpop.eup %362 }
  0xf6   :  { %v365_v53 = vpop.eup %364 }
  0xf7   :  { %v121_v35 = vmul.f32 %v359_v27, %v119_v31  ;;  %v120_v36 = vadd.f32 -1.4531521, %v118_v34 }
  0xf9   :  { %v123_v37 = vadd.f32 1.4214138, %v121_v35  ;;  %v122_v39 = vmul.f32 %v361_v30, %v120_v36 }
  0xfb   :  { %v125_v40 = vmul.f32 %v359_v27, %v123_v37  ;;  %v124_v41 = vadd.f32 1.4214138, %v122_v39 }
  0xfd   :  { %v127_v42 = vadd.f32 -0.28449672, %v125_v40  ;;  %v126_v43 = vmul.f32 %v361_v30, %v124_v41  ;;  %v321_v40 = vld [vmem:[%s479_s6] ss:$0 sm:$0xff] }
  0xff   :  { %v129_v44 = vmul.f32 %v359_v27, %v127_v42  ;;  %v128_v45 = vadd.f32 -0.28449672, %v126_v43 }
 0x101   :  { %v131_v46 = vadd.f32 0.2548296, %v129_v44  ;;  %v130_v47 = vmul.f32 %v361_v30, %v128_v45 }
 0x103   :  { %v133_v48 = vmul.f32 %v359_v27, %v131_v46  ;;  %v132_v50 = vadd.f32 0.2548296, %v130_v47 }
 0x105   :  { %v143_v51 = vmul.f32 %v363_v49, %v133_v48  ;;  %v134_v52 = vmul.f32 %v361_v30, %v132_v50 }
 0x107   :  { %v145_v54 = vsub.f32 1.0, %v143_v51  ;;  %v144_v55 = vmul.f32 %v365_v53, %v134_v52 }
 0x109   :  { %v149_v56 = vsub.f32 0.0, %v145_v54  ;;  %v146_v57 = vsub.f32 1.0, %v144_v55 }
 0x10b   :  { %v151_v58 = vsel %vm147_vm2, %v145_v54, %v149_v56  ;;  %v150_v59 = vsub.f32 0.0, %v146_v57 }
 0x10c   :  { %v155_v60 = vadd.f32 1.0, %v151_v58 }
 0x10d   :  { %v152_v61 = vsel %vm148_vm3, %v146_v57, %v150_v59 }
 0x10e   :  { %v156_v0 = vadd.f32 1.0, %v152_v61  ;;  %v157_v1 = vmul.f32 %v155_v60, %v153_v62 }
 0x110   :  { %v158_v2 = vmul.f32 %v156_v0, %v154_v63 }
 0x112   :  { %v161_v5 = vpack.c.bf16 %v158_v2, %v157_v1 }
 0x114   :  { %347 = vmatmul.mubr.msk.bf16.vlgmr.msra.gmra.mrb[0].mxu1 %vm194_vm4, %v161_v5 }
 0x1e7   :  { %v232_v7 = vpop.f32.mrb[0].mxu1 }
 0x1e8   :  { %v239_v9 = vadd.f32 %v232_v7, %v159_v6  ;;  %v348_v10 = vpop.f32.mrb[1].mxu1 }
 0x1e9   :  { %v235_v11 = vpop.f32.mrb[2].mxu1 }
 0x1ea   :  { %241 = vst.msk [vmem:[#allocation2] sm:$0xff] %vm31_vm0, %v239_v9  ;;  %v240_v13 = vadd.f32 %v235_v11, %v160_v8  ;;  %v349_v14 = vpop.f32.mrb[3].mxu1 }
 0x1ec   :  { %242 = vst.msk [vmem:[#allocation2 + $0x8] sm:$0xff] %vm31_vm0, %v240_v13 }
 0x1f1   :  { %v246_v15 = vld [vmem:[#allocation2] sm:$0xff] }
 0x1f2   :  { %v255_v16 = vadd.f32 %v319_v12, %v246_v15 }
 0x1f3   :  { %v247_v17 = vld [vmem:[#allocation2 + $0x8] sm:$0xff] }
 0x1f4   :  { %v257_v18 = vadd.f32 %v255_v16, %v423_v3  ;;  %v256_v19 = vadd.f32 %v319_v12, %v247_v17 }
 0x1f6   :  { %v259_v20 = vsel %vm31_vm0, %v257_v18, 0.0  ;;  %v258_v21 = vadd.f32 %v256_v19, %v428_v4 }
 0x1f7   :  { %260 = vadd.xlane.f32.xlu0 %v259_v20 }
 0x1f8   :  { %v262_v22 = vsel %vm31_vm0, %v258_v21, 0.0 }
 0x1fb   :  { %263 = vadd.xlane.f32.xlu0 %v262_v22 }
 0x284   :  { %v261_v23 = vpop.xlane.xlu0 %260 }
 0x285   :  { %v266_v24 = vmul.f32 0.03125, %v261_v23 }
 0x287   :  { %v268_v25 = vsub.f32 %v257_v18, %v266_v24 }
 0x288   :  { %v264_v26 = vpop.xlane.xlu0 %263 }
 0x289   :  { %v267_v27 = vmul.f32 0.03125, %v264_v26  ;;  %v270_v28 = vmul.f32 %v268_v25, %v268_v25 }
 0x28b   :  { %v269_v29 = vsub.f32 %v258_v21, %v267_v27  ;;  %v272_v30 = vsel %vm31_vm0, %v270_v28, 0.0 }
 0x28c   :  { %273 = vadd.xlane.f32.xlu1 %v272_v30 }
 0x28d   :  { %v271_v3 = vmul.f32 %v269_v29, %v269_v29 }
 0x28f   :  { %v275_v31 = vsel %vm31_vm0, %v271_v3, 0.0 }
 0x290   :  { %276 = vadd.xlane.f32.xlu1 %v275_v31 }
 0x319   :  { %v274_v32 = vpop.xlane.xlu1 %273 }
 0x31a   :  { %v278_v4 = vmul.f32 0.03125, %v274_v32 }
 0x31c   :  { %v280_v33 = vadd.f32 1e-12, %v278_v4 }
 0x31d   :  { %v277_v34 = vpop.xlane.xlu1 %276 }
 0x31e   :  { %366 = vrsqrt.f32 %v280_v33  ;;  %v279_v35 = vmul.f32 0.03125, %v277_v34 }
 0x320   :  { %v281_v36 = vadd.f32 1e-12, %v279_v35 }
 0x322   :  { %368 = vrsqrt.f32 %v281_v36 }
 0x328   :  { %v367_v37 = vpop.eup %366 }
 0x329   :  { %v284_v39 = vmul.f32 %v367_v37, %v268_v25 }
 0x32b   :  { %v293_v41 = vmul.f32 %v320_v38, %v284_v39 }
 0x32c   :  { %v369_v42 = vpop.eup %368 }
 0x32d   :  { %v302_v43 = vadd.f32 %v321_v40, %v293_v41  ;;  %v285_v44 = vmul.f32 %v369_v42, %v269_v29 }
 0x32f   :  { %304 = vst.msk [vmem:[%s480_s7] sm:$0xff] %vm31_vm0, %v302_v43  ;;  %v294_v45 = vmul.f32 %v320_v38, %v285_v44 }
 0x331   :  { %v303_v46 = vadd.f32 %v321_v40, %v294_v45 }
 0x333   :  { %305 = vst.msk [vmem:[%s480_s7 + $0x8] sm:$0xff] %vm31_vm0, %v303_v46 }

// kernel: lim_bert_layer_forward.10
= control target key start
LH: loop header
LB: loop body
LE: loop exit
PB: predicated region body
PF: predicated region fallthrough
CT: control target
= control target key end

     0   :  { %v206_v0 = vmov 0.0|0.0   ;;  %v207_v4 = vmov 0.0   ;;  %vm208_vm0 = vmmov 0   ;;  %s286_s1 = inlined_call_operand.vmem [shape: f32[128,128], index: 1, kind: input, shape index: {}]   ;;  %s287_s0 = inlined_call_operand.vmem [shape: f32[2,128], index: 0, kind: input, shape index: {}]   ;;  %s288_s2 = inlined_call_operand.vmem [shape: f32[1,128], index: 2, kind: input, shape index: {}]   ;;  %s289_s3 = inlined_call_operand.vmem [shape: f32[2,128], index: 3, kind: output, shape index: {}]  }
   0x1   :  { %179 = vmatprep.subr.bf16.mxu0 %v206_v0  ;;  %v21_v1 = vld [vmem:[%s286_s1] sm:$0xff]  ;;  %v22_v2 = vld [vmem:[%s286_s1 + $0x8] sm:$0xff]  ;;  %v23_v3 = vld [vmem:[%s286_s1 + $0x10] sm:$0xff]  ;;  %18 = vst [vmem:[#allocation2] sm:$0x3] %v207_v4  ;;  %176 = vmatprep.mubr.msk.f32.mxu0 %vm208_vm0, %v207_v4 }
   0x2   :  { %v180_v5 = vpack.c.bf16 %v22_v2, %v21_v1  ;;  %v24_v6 = vld [vmem:[%s286_s1 + $0x18] sm:$0xff]  ;;  %v25_v8 = vld [vmem:[%s286_s1 + $0x20] sm:$0xff]  ;;  %v26_v9 = vld [vmem:[%s286_s1 + $0x28] sm:$0xff] }
   0x3   :  { %v183_v7 = vpack.c.bf16 %v24_v6, %v23_v3  ;;  %v186_v10 = vpack.c.bf16 %v26_v9, %v25_v8  ;;  %v27_v11 = vld [vmem:[%s286_s1 + $0x30] sm:$0xff]  ;;  %v28_v12 = vld [vmem:[%s286_s1 + $0x38] sm:$0xff]  ;;  %v29_v14 = vld [vmem:[%s286_s1 + $0x40] sm:$0xff] }
   0x4   :  { %181 = vmatpush3.bf16.msra.mxu0 %v180_v5  ;;  %v189_v13 = vpack.c.bf16 %v28_v12, %v27_v11  ;;  %v30_v15 = vld [vmem:[%s286_s1 + $0x48] sm:$0xff]  ;;  %v31_v17 = vld [vmem:[%s286_s1 + $0x50] sm:$0xff]  ;;  %v32_v18 = vld [vmem:[%s286_s1 + $0x58] sm:$0xff] }
   0x5   :  { %182 = vmatprep.subr.bf16.mxu0 %v206_v0  ;;  %v192_v16 = vpack.c.bf16 %v30_v15, %v29_v14  ;;  %v195_v19 = vpack.c.bf16 %v32_v18, %v31_v17  ;;  %v33_v20 = vld [vmem:[%s286_s1 + $0x60] sm:$0xff]  ;;  %v34_v21 = vld [vmem:[%s286_s1 + $0x68] sm:$0xff]  ;;  %v35_v23 = vld [vmem:[%s286_s1 + $0x70] sm:$0xff] }
   0x6   :  { %v198_v22 = vpack.c.bf16 %v34_v21, %v33_v20  ;;  %v36_v24 = vld [vmem:[%s286_s1 + $0x78] sm:$0xff]  ;;  %v20_v26 = vld [vmem:[%s287_s0] sm:$0x3] }
   0x7   :  { %v201_v25 = vpack.c.bf16 %v36_v24, %v35_v23  ;;  %v126_v31 = vld [vmem:[%s288_s2] ss:$0 sm:$0xff] }
   0x8   :  { %184 = vmatpush3.bf16.msra.mxu0 %v183_v7  ;;  %v19_v27 = vld [vmem:[#allocation2] sm:$0x3] }
   0x9   :  { %185 = vmatprep.subr.bf16.mxu0 %v206_v0 }
   0xc   :  { %187 = vmatpush3.bf16.msra.mxu0 %v186_v10 }
   0xd   :  { %188 = vmatprep.subr.bf16.mxu0 %v206_v0 }
  0x10   :  { %190 = vmatpush3.bf16.msra.mxu0 %v189_v13 }
  0x11   :  { %191 = vmatprep.subr.bf16.mxu0 %v206_v0 }
  0x14   :  { %193 = vmatpush3.bf16.msra.mxu0 %v192_v16 }
  0x15   :  { %194 = vmatprep.subr.bf16.mxu0 %v206_v0 }
  0x18   :  { %196 = vmatpush3.bf16.msra.mxu0 %v195_v19 }
  0x19   :  { %197 = vmatprep.subr.bf16.mxu0 %v206_v0 }
  0x1c   :  { %199 = vmatpush3.bf16.msra.mxu0 %v198_v22 }
  0x1d   :  { %200 = vmatprep.subr.bf16.mxu0 %v206_v0 }
  0x20   :  { %202 = vmatpush3.bf16.msra.mxu0 %v201_v25 }
  0x23   :  { %177 = vmatmul.mubr.f32.vlgmr.msra.gmra.mrb[0].mxu0 %v20_v26 }
  0xf6   :  { %v103_v28 = vpop.f32.mrb[0].mxu0 }
  0xf7   :  { %v107_v29 = vadd.f32 %v103_v28, %v19_v27  ;;  %v178_v30 = vpop.f32.mrb[1].mxu0 }
  0xf9   :  { %108 = vst [vmem:[#allocation2] sm:$0x3] %v107_v29 }
 0x100   :  { %v112_v32 = vld [vmem:[#allocation2] sm:$0x3] }
 0x101   :  { %v120_v33 = vadd.f32 %v126_v31, %v112_v32 }
 0x103   :  { %121 = vst [vmem:[%s289_s3] sm:$0x3] %v120_v33 }

</bundles_post_ra>
